<compile_context>
chip_gen: v5e
topology: v5e:2x2
jax: 0.10.0
libtpu: 0.0.40
codegen_flags: <defaults>
</compile_context>

<pallas_src>
import jax
import jax.numpy as jnp
import numpy as np
from jax import lax
from jax.experimental import pallas as pl
from jax.experimental.pallas import tpu as pltpu

# ---------------- config (mirrors auto_weighted_config) ----------------
TRANSFORM_LAYER_1 = 128
INTEGRATE_1 = 128
INTEGRATE_2 = 256
INTEGRATE_3 = 16
WEIGHTED_1 = 512
WEIGHTED_2 = 128
WEIGHTED_3 = 16
OUTPUT_SIZE = 2
OUT_PAD = 128  # lane-dense padded width of the kernel output


def _round_up(x, m):
    return ((x + m - 1) // m) * m


# ---------------- fused Pallas kernel ----------------
def _fused_kernel(hist_ref, fut_ref,
                  wt1_ref, wt2_ref,
                  wi1_ref, wi2_ref, wi3_ref,
                  ww1_ref, ww2_ref, ww3_ref, ww4_ref,
                  out_ref):
    """Entire auto_weighted forward for one batch tile.

    hist_ref: (cb, tb, F)    cycle-major history rows
    fut_ref : (cl, tb, F-1)  cycle-major future rows (feature 0 dropped)
    out_ref : (tb, OUT_PAD)  softmax probabilities in cols [0, OUTPUT_SIZE)
    """
    cb, tb, f = hist_ref.shape
    cl = fut_ref.shape[0]

    # Weights are VMEM-resident (constant index maps); load each once.
    Wt1 = wt1_ref[...]
    Wt2 = wt2_ref[...]
    Wi1 = wi1_ref[...]
    Wi2 = wi2_ref[...]
    Wi3 = wi3_ref[...]
    Ww1 = ww1_ref[...]
    Ww2 = ww2_ref[...]
    Ww3 = ww3_ref[...]
    Ww4 = ww4_ref[...]

    def integrate(x):  # (n, F-1) -> (n, 16)
        h = jnp.maximum(jnp.dot(x, Wi1, preferred_element_type=jnp.float32), 0.0)
        h = jnp.maximum(jnp.dot(h, Wi2, preferred_element_type=jnp.float32), 0.0)
        return jnp.dot(h, Wi3, preferred_element_type=jnp.float32)

    # ---- history: transform + integrate, batched over all cb cycles ----
    # (cb, tb, F) -> (cb*tb, F) is a tile-aligned leading-dim merge (tb % 8 == 0).
    xh = hist_ref[...].reshape(cb * tb, f)
    h = jnp.maximum(jnp.dot(xh, Wt1, preferred_element_type=jnp.float32), 0.0)
    ht = jnp.dot(h, Wt2, preferred_element_type=jnp.float32)          # (cb*tb, F-1)
    g_hist = integrate(ht)                                            # (cb*tb, 16)

    # ---- future: integrate, batched over all cl cycles ----
    xf = fut_ref[...].reshape(cl * tb, f - 1)
    g_fut = integrate(xf)                                             # (cl*tb, 16)

    # ---- assemble (tb, T*16) activation in reference flatten order ----
    # Row-major flatten of (T, 16): cycle t occupies lanes [t*16, (t+1)*16).
    pieces = ([g_hist[t * tb:(t + 1) * tb, :] for t in range(cb)]
              + [g_fut[t * tb:(t + 1) * tb, :] for t in range(cl)])
    act = jnp.concatenate(pieces, axis=-1)                            # (tb, T*16)

    # ---- weighted head (single K = T*16 matmul instead of T K=16 partials) ----
    z = jnp.maximum(jnp.dot(act, Ww1, preferred_element_type=jnp.float32), 0.0)
    z = jnp.maximum(jnp.dot(z, Ww2, preferred_element_type=jnp.float32), 0.0)
    z = jnp.maximum(jnp.dot(z, Ww3, preferred_element_type=jnp.float32), 0.0)
    # Ww4 is zero-padded (16, OUT_PAD) so this matmul and the store are lane-dense.
    logits = jnp.dot(z, Ww4, preferred_element_type=jnp.float32)      # (tb, OUT_PAD)

    # Stable softmax over the OUTPUT_SIZE valid lanes only (mask the padding).
    col = lax.broadcasted_iota(jnp.int32, logits.shape, 1)
    valid = col < OUTPUT_SIZE
    zm = jnp.where(valid, logits, -jnp.inf)
    m = jnp.max(zm, axis=-1, keepdims=True)
    e = jnp.exp(zm - m)                        # padded lanes -> exp(-inf) = 0
    s = jnp.sum(e, axis=-1, keepdims=True)
    out_ref[...] = (e / s).astype(out_ref.dtype)


def _choose_tiling(batch):
    """Return (batch_tile, padded_batch).

    * tile is always a multiple of 8 (tile-aligned sublane merges in-kernel)
    * batch >= 16 -> at least 2 grid steps ("parallel" axis can shard across
      v7x's two TensorCores, and pipelining has something to overlap)
    * tile capped at 512 rows so activations stay well inside v7x's 32 MiB
      scoped VMEM; v5e/v6e (128 MiB) are comfortably covered too.
    """
    b8 = _round_up(max(batch, 1), 8)
    if batch < 16:
        tb = b8
    else:
        tb = min(512, _round_up(pl.cdiv(b8, 2), 8))
    padded = _round_up(b8, tb)
    return tb, padded


# ---------------- module wrapper ----------------
class AutoWeightedPallas:
    """JAX/Pallas port of `auto_weighted` (bias-free Linear stacks + softmax).

    Weights are stored pre-transposed as (in_features, out_features) so every
    kernel matmul is x @ W on the MXU.
    """

    def __init__(self, input_size, cycle_num_before, cycle_num_later, key):
        self.feature_size = input_size
        self.cycle_num_before = cycle_num_before
        self.cycle_num_later = cycle_num_later

        f = input_size
        t = cycle_num_before + cycle_num_later

        def init(key, fan_in, fan_out):
            bound = 1.0 / np.sqrt(fan_in)
            return jax.random.uniform(
                key, (fan_in, fan_out), jnp.float32, minval=-bound, maxval=bound)

        keys = jax.random.split(key, 9)
        # transform: Linear(F, 128) -> ReLU -> Linear(128, F-1)
        self.transform_w = [
            init(keys[0], f, TRANSFORM_LAYER_1),
            init(keys[1], TRANSFORM_LAYER_1, f - 1),
        ]
        # integrate: F-1 -> 128 -> 256 -> 16 (ReLU between)
        self.integrate_w = [
            init(keys[2], f - 1, INTEGRATE_1),
            init(keys[3], INTEGRATE_1, INTEGRATE_2),
            init(keys[4], INTEGRATE_2, INTEGRATE_3),
        ]
        # weighted: T*16 -> 512 -> 128 -> 16 -> 2 (ReLU between)
        self.weighted_w = [
            init(keys[5], t * INTEGRATE_3, WEIGHTED_1),
            init(keys[6], WEIGHTED_1, WEIGHTED_2),
            init(keys[7], WEIGHTED_2, WEIGHTED_3),
            init(keys[8], WEIGHTED_3, OUTPUT_SIZE),
        ]
        # MXU/store-friendly zero-padded final projection: (16, 2) -> (16, 128).
        self.ww4_padded = jnp.zeros((WEIGHTED_3, OUT_PAD), jnp.float32)
        self.ww4_padded = self.ww4_padded.at[:, :OUTPUT_SIZE].set(self.weighted_w[3])

    def __call__(self, dataset):
        b = dataset.shape[0]
        f = self.feature_size
        cb, cl = self.cycle_num_before, self.cycle_num_later
        t = cb + cl

        tb, padded_b = _choose_tiling(b)
        if padded_b != b:
            # Pad with zero rows (rows are independent; padded rows are sliced off).
            dataset = jnp.pad(dataset,
                              ((0, padded_b - b), (0, 0), (0, 0)))

        # Layout glue only (cheap XLA transposes, no computed intermediates
        # through HBM): cycle-major views so each grid step reads a contiguous
        # batch tile for every cycle and the in-kernel (cycle, tile) merge is
        # a free sublane reshape.
        hist_cm = jnp.transpose(dataset[:, :cb, :], (1, 0, 2))            # (cb, Bp, F)
        fut_cm = jnp.transpose(dataset[:, cb:cb + cl, 1:], (1, 0, 2))     # (cl, Bp, F-1)

        grid = (padded_b // tb,)

        weights = (self.transform_w[0], self.transform_w[1],
                   self.integrate_w[0], self.integrate_w[1], self.integrate_w[2],
                   self.weighted_w[0], self.weighted_w[1], self.weighted_w[2],
                   self.ww4_padded)

        in_specs = [
            pl.BlockSpec((cb, tb, f), lambda i: (0, i, 0)),
            pl.BlockSpec((cl, tb, f - 1), lambda i: (0, i, 0)),
        ] + [
            # Constant index maps -> weights DMA'd once, resident in VMEM.
            pl.BlockSpec(w.shape, lambda i: (0, 0)) for w in weights
        ]

        flops = 2 * padded_b * (
            cb * (f * TRANSFORM_LAYER_1 + TRANSFORM_LAYER_1 * (f - 1))
            + t * ((f - 1) * INTEGRATE_1
                   + INTEGRATE_1 * INTEGRATE_2
                   + INTEGRATE_2 * INTEGRATE_3)
            + t * INTEGRATE_3 * WEIGHTED_1
            + WEIGHTED_1 * WEIGHTED_2
            + WEIGHTED_2 * WEIGHTED_3
            + WEIGHTED_3 * OUT_PAD)
        bytes_accessed = 4 * (hist_cm.size + fut_cm.size
                              + sum(int(np.prod(w.shape)) for w in weights)
                              + padded_b * OUT_PAD)

        out_padded = pl.pallas_call(
            _fused_kernel,
            grid=grid,
            in_specs=in_specs,
            out_specs=pl.BlockSpec((tb, OUT_PAD), lambda i: (i, 0)),
            out_shape=jax.ShapeDtypeStruct((padded_b, OUT_PAD), jnp.float32),
            compiler_params=pltpu.CompilerParams(
                dimension_semantics=("parallel",),
                vmem_limit_bytes=64 * 1024 * 1024),
            cost_estimate=pl.CostEstimate(
                flops=flops,
                transcendentals=padded_b * OUT_PAD,
                bytes_accessed=bytes_accessed),
        )(hist_cm, fut_cm, *weights)

        return out_padded[:b, :OUTPUT_SIZE]                               # (B, 2)

    # pure-JAX reference for verification
    def reference(self, dataset):
        b = dataset.shape[0]
        f = self.feature_size
        cb, cl = self.cycle_num_before, self.cycle_num_later
        t = cb + cl

        def mlp(x, ws, softmax_out=False):
            h = x
            for i, w in enumerate(ws):
                h = h @ w
                if i < len(ws) - 1:
                    h = jnp.maximum(h, 0.0)
            if softmax_out:
                h = jax.nn.softmax(h, axis=-1)
            return h

        hist = dataset[:, :cb, :]
        fut = dataset[:, cb:cb + cl, 1:]
        ht = mlp(hist.reshape(b * cb, f), self.transform_w).reshape(b, cb, f - 1)
        integ = jnp.concatenate([ht, fut], axis=1).reshape(b * t, f - 1)
        integ = mlp(integ, self.integrate_w).reshape(b, t * INTEGRATE_3)
        return mlp(integ, self.weighted_w, softmax_out=True)


if __name__ == "__main__":
    key = jax.random.PRNGKey(0)
    k_data, k_params = jax.random.split(key)

    # Small shapes consistent with the forward:
    #   input_size (F) = 8, cycle_num_before = 4, cycle_num_later = 4, batch = 2
    B, F, CB, CL = 2, 8, 4, 4
    T = CB + CL
    dataset = jax.random.normal(k_data, (B, T, F), dtype=jnp.float32)

    model = AutoWeightedPallas(input_size=F, cycle_num_before=CB,
                               cycle_num_later=CL, key=k_params)

    out = model(dataset)
    out = jax.block_until_ready(out)

    ref = model.reference(dataset)
    np.testing.assert_allclose(np.asarray(out), np.asarray(ref),
                               rtol=1e-4, atol=1e-5)
    assert out.shape == (B, OUTPUT_SIZE)
    # rows of a softmax sum to 1
    np.testing.assert_allclose(np.asarray(out).sum(axis=1), np.ones(B),
                               rtol=1e-5, atol=1e-5)

    print("KERNEL_OK")
</pallas_src>

<mosaic_0001>
module attributes {stable_mosaic.version = 11 : i64} {
  func.func @_fused_kernel(%arg0: i32, %arg1: memref<4x8x8xf32, #tpu.memory_space<vmem>>, %arg2: memref<4x8x7xf32, #tpu.memory_space<vmem>>, %arg3: memref<8x128xf32, #tpu.memory_space<vmem>>, %arg4: memref<128x7xf32, #tpu.memory_space<vmem>>, %arg5: memref<7x128xf32, #tpu.memory_space<vmem>>, %arg6: memref<128x256xf32, #tpu.memory_space<vmem>>, %arg7: memref<256x16xf32, #tpu.memory_space<vmem>>, %arg8: memref<128x512xf32, #tpu.memory_space<vmem>>, %arg9: memref<512x128xf32, #tpu.memory_space<vmem>>, %arg10: memref<128x16xf32, #tpu.memory_space<vmem>>, %arg11: memref<16x128xf32, #tpu.memory_space<vmem>>, %arg12: memref<8x128xf32, #tpu.memory_space<vmem>>) attributes {dimension_semantics = [#tpu.dimension_semantics<parallel>], iteration_bounds = array<i64: 1>, scalar_prefetch = 0 : i64, scratch_operands = 0 : i64, tpu.core_type = #tpu.core_type<tc>, window_params = [{transform_indices = @transform_0, window_bounds = array<i64: 4, 8, 8>}, {transform_indices = @transform_1, window_bounds = array<i64: 4, 8, 7>}, {pipeline_mode = #tpu.pipeline_mode<synchronous>, transform_indices = @transform_2, window_bounds = array<i64: 8, 128>}, {pipeline_mode = #tpu.pipeline_mode<synchronous>, transform_indices = @transform_3, window_bounds = array<i64: 128, 7>}, {pipeline_mode = #tpu.pipeline_mode<synchronous>, transform_indices = @transform_4, window_bounds = array<i64: 7, 128>}, {pipeline_mode = #tpu.pipeline_mode<synchronous>, transform_indices = @transform_5, window_bounds = array<i64: 128, 256>}, {pipeline_mode = #tpu.pipeline_mode<synchronous>, transform_indices = @transform_6, window_bounds = array<i64: 256, 16>}, {pipeline_mode = #tpu.pipeline_mode<synchronous>, transform_indices = @transform_7, window_bounds = array<i64: 128, 512>}, {pipeline_mode = #tpu.pipeline_mode<synchronous>, transform_indices = @transform_8, window_bounds = array<i64: 512, 128>}, {pipeline_mode = #tpu.pipeline_mode<synchronous>, transform_indices = @transform_9, window_bounds = array<i64: 128, 16>}, {pipeline_mode = #tpu.pipeline_mode<synchronous>, transform_indices = @transform_10, window_bounds = array<i64: 16, 128>}, {transform_indices = @transform_11, window_bounds = array<i64: 8, 128>}]} {
    %c0 = arith.constant 0 : index
    %c0_0 = arith.constant 0 : index
    %0 = vector.load %arg3[%c0, %c0_0] : memref<8x128xf32, #tpu.memory_space<vmem>>, vector<8x128xf32>
    %c0_1 = arith.constant 0 : index
    %c0_2 = arith.constant 0 : index
    %1 = vector.load %arg4[%c0_1, %c0_2] : memref<128x7xf32, #tpu.memory_space<vmem>>, vector<128x7xf32>
    %c0_3 = arith.constant 0 : index
    %c0_4 = arith.constant 0 : index
    %2 = vector.load %arg5[%c0_3, %c0_4] : memref<7x128xf32, #tpu.memory_space<vmem>>, vector<7x128xf32>
    %c0_5 = arith.constant 0 : index
    %c0_6 = arith.constant 0 : index
    %3 = vector.load %arg6[%c0_5, %c0_6] : memref<128x256xf32, #tpu.memory_space<vmem>>, vector<128x256xf32>
    %c0_7 = arith.constant 0 : index
    %c0_8 = arith.constant 0 : index
    %4 = vector.load %arg7[%c0_7, %c0_8] : memref<256x16xf32, #tpu.memory_space<vmem>>, vector<256x16xf32>
    %c0_9 = arith.constant 0 : index
    %c0_10 = arith.constant 0 : index
    %5 = vector.load %arg8[%c0_9, %c0_10] : memref<128x512xf32, #tpu.memory_space<vmem>>, vector<128x512xf32>
    %c0_11 = arith.constant 0 : index
    %c0_12 = arith.constant 0 : index
    %6 = vector.load %arg9[%c0_11, %c0_12] : memref<512x128xf32, #tpu.memory_space<vmem>>, vector<512x128xf32>
    %c0_13 = arith.constant 0 : index
    %c0_14 = arith.constant 0 : index
    %7 = vector.load %arg10[%c0_13, %c0_14] : memref<128x16xf32, #tpu.memory_space<vmem>>, vector<128x16xf32>
    %c0_15 = arith.constant 0 : index
    %c0_16 = arith.constant 0 : index
    %8 = vector.load %arg11[%c0_15, %c0_16] : memref<16x128xf32, #tpu.memory_space<vmem>>, vector<16x128xf32>
    %c0_17 = arith.constant 0 : index
    %c0_18 = arith.constant 0 : index
    %c0_19 = arith.constant 0 : index
    %9 = vector.load %arg1[%c0_17, %c0_18, %c0_19] : memref<4x8x8xf32, #tpu.memory_space<vmem>>, vector<4x8x8xf32>
    %10 = vector.shape_cast %9 : vector<4x8x8xf32> to vector<32x8xf32>
    %cst = arith.constant dense<0.000000e+00> : vector<32x128xf32>
    %11 = tpu.matmul %10, %0, %cst {dimension_numbers = #tpu.dot_dimension_numbers<[1], [0], [0], [1], [0, 0, 1, 1], [], []>} : vector<32x8xf32>, vector<8x128xf32>, vector<32x128xf32> -> vector<32x128xf32>
    %cst_20 = arith.constant 0.000000e+00 : f32
    %12 = vector.broadcast %cst_20 : f32 to vector<32x128xf32>
    %13 = arith.maximumf %11, %12 : vector<32x128xf32>
    %cst_21 = arith.constant dense<0.000000e+00> : vector<32x7xf32>
    %14 = tpu.matmul %13, %1, %cst_21 {dimension_numbers = #tpu.dot_dimension_numbers<[1], [0], [0], [1], [0, 0, 1, 1], [], []>} : vector<32x128xf32>, vector<128x7xf32>, vector<32x7xf32> -> vector<32x7xf32>
    %cst_22 = arith.constant dense<0.000000e+00> : vector<32x128xf32>
    %15 = tpu.matmul %14, %2, %cst_22 {dimension_numbers = #tpu.dot_dimension_numbers<[1], [0], [0], [1], [0, 0, 1, 1], [], []>} : vector<32x7xf32>, vector<7x128xf32>, vector<32x128xf32> -> vector<32x128xf32>
    %cst_23 = arith.constant 0.000000e+00 : f32
    %16 = vector.broadcast %cst_23 : f32 to vector<32x128xf32>
    %17 = arith.maximumf %15, %16 : vector<32x128xf32>
    %cst_24 = arith.constant dense<0.000000e+00> : vector<32x256xf32>
    %18 = tpu.matmul %17, %3, %cst_24 {dimension_numbers = #tpu.dot_dimension_numbers<[1], [0], [0], [1], [0, 0, 1, 1], [], []>} : vector<32x128xf32>, vector<128x256xf32>, vector<32x256xf32> -> vector<32x256xf32>
    %cst_25 = arith.constant 0.000000e+00 : f32
    %19 = vector.broadcast %cst_25 : f32 to vector<32x256xf32>
    %20 = arith.maximumf %18, %19 : vector<32x256xf32>
    %cst_26 = arith.constant dense<0.000000e+00> : vector<32x16xf32>
    %21 = tpu.matmul %20, %4, %cst_26 {dimension_numbers = #tpu.dot_dimension_numbers<[1], [0], [0], [1], [0, 0, 1, 1], [], []>} : vector<32x256xf32>, vector<256x16xf32>, vector<32x16xf32> -> vector<32x16xf32>
    %c0_27 = arith.constant 0 : index
    %c0_28 = arith.constant 0 : index
    %c0_29 = arith.constant 0 : index
    %22 = vector.load %arg2[%c0_27, %c0_28, %c0_29] : memref<4x8x7xf32, #tpu.memory_space<vmem>>, vector<4x8x7xf32>
    %23 = vector.shape_cast %22 : vector<4x8x7xf32> to vector<32x7xf32>
    %cst_30 = arith.constant dense<0.000000e+00> : vector<32x128xf32>
    %24 = tpu.matmul %23, %2, %cst_30 {dimension_numbers = #tpu.dot_dimension_numbers<[1], [0], [0], [1], [0, 0, 1, 1], [], []>} : vector<32x7xf32>, vector<7x128xf32>, vector<32x128xf32> -> vector<32x128xf32>
    %cst_31 = arith.constant 0.000000e+00 : f32
    %25 = vector.broadcast %cst_31 : f32 to vector<32x128xf32>
    %26 = arith.maximumf %24, %25 : vector<32x128xf32>
    %cst_32 = arith.constant dense<0.000000e+00> : vector<32x256xf32>
    %27 = tpu.matmul %26, %3, %cst_32 {dimension_numbers = #tpu.dot_dimension_numbers<[1], [0], [0], [1], [0, 0, 1, 1], [], []>} : vector<32x128xf32>, vector<128x256xf32>, vector<32x256xf32> -> vector<32x256xf32>
    %cst_33 = arith.constant 0.000000e+00 : f32
    %28 = vector.broadcast %cst_33 : f32 to vector<32x256xf32>
    %29 = arith.maximumf %27, %28 : vector<32x256xf32>
    %cst_34 = arith.constant dense<0.000000e+00> : vector<32x16xf32>
    %30 = tpu.matmul %29, %4, %cst_34 {dimension_numbers = #tpu.dot_dimension_numbers<[1], [0], [0], [1], [0, 0, 1, 1], [], []>} : vector<32x256xf32>, vector<256x16xf32>, vector<32x16xf32> -> vector<32x16xf32>
    %31 = vector.extract_strided_slice %21 {offsets = [0, 0], sizes = [8, 16], strides = [1, 1]} : vector<32x16xf32> to vector<8x16xf32>
    %32 = vector.extract_strided_slice %21 {offsets = [8, 0], sizes = [8, 16], strides = [1, 1]} : vector<32x16xf32> to vector<8x16xf32>
    %33 = vector.extract_strided_slice %21 {offsets = [16, 0], sizes = [8, 16], strides = [1, 1]} : vector<32x16xf32> to vector<8x16xf32>
    %34 = vector.extract_strided_slice %21 {offsets = [24, 0], sizes = [8, 16], strides = [1, 1]} : vector<32x16xf32> to vector<8x16xf32>
    %35 = vector.extract_strided_slice %30 {offsets = [0, 0], sizes = [8, 16], strides = [1, 1]} : vector<32x16xf32> to vector<8x16xf32>
    %36 = vector.extract_strided_slice %30 {offsets = [8, 0], sizes = [8, 16], strides = [1, 1]} : vector<32x16xf32> to vector<8x16xf32>
    %37 = vector.extract_strided_slice %30 {offsets = [16, 0], sizes = [8, 16], strides = [1, 1]} : vector<32x16xf32> to vector<8x16xf32>
    %38 = vector.extract_strided_slice %30 {offsets = [24, 0], sizes = [8, 16], strides = [1, 1]} : vector<32x16xf32> to vector<8x16xf32>
    %39 = tpu.concatenate %31, %32, %33, %34, %35, %36, %37, %38 in 1 : vector<8x16xf32>, vector<8x16xf32>, vector<8x16xf32>, vector<8x16xf32>, vector<8x16xf32>, vector<8x16xf32>, vector<8x16xf32>, vector<8x16xf32> -> vector<8x128xf32>
    %cst_35 = arith.constant dense<0.000000e+00> : vector<8x512xf32>
    %40 = tpu.matmul %39, %5, %cst_35 {dimension_numbers = #tpu.dot_dimension_numbers<[1], [0], [0], [1], [0, 0, 1, 1], [], []>} : vector<8x128xf32>, vector<128x512xf32>, vector<8x512xf32> -> vector<8x512xf32>
    %cst_36 = arith.constant 0.000000e+00 : f32
    %41 = vector.broadcast %cst_36 : f32 to vector<8x512xf32>
    %42 = arith.maximumf %40, %41 : vector<8x512xf32>
    %cst_37 = arith.constant dense<0.000000e+00> : vector<8x128xf32>
    %43 = tpu.matmul %42, %6, %cst_37 {dimension_numbers = #tpu.dot_dimension_numbers<[1], [0], [0], [1], [0, 0, 1, 1], [], []>} : vector<8x512xf32>, vector<512x128xf32>, vector<8x128xf32> -> vector<8x128xf32>
    %cst_38 = arith.constant 0.000000e+00 : f32
    %44 = vector.broadcast %cst_38 : f32 to vector<8x128xf32>
    %45 = arith.maximumf %43, %44 : vector<8x128xf32>
    %cst_39 = arith.constant dense<0.000000e+00> : vector<8x16xf32>
    %46 = tpu.matmul %45, %7, %cst_39 {dimension_numbers = #tpu.dot_dimension_numbers<[1], [0], [0], [1], [0, 0, 1, 1], [], []>} : vector<8x128xf32>, vector<128x16xf32>, vector<8x16xf32> -> vector<8x16xf32>
    %cst_40 = arith.constant 0.000000e+00 : f32
    %47 = vector.broadcast %cst_40 : f32 to vector<8x16xf32>
    %48 = arith.maximumf %46, %47 : vector<8x16xf32>
    %cst_41 = arith.constant dense<0.000000e+00> : vector<8x128xf32>
    %49 = tpu.matmul %48, %8, %cst_41 {dimension_numbers = #tpu.dot_dimension_numbers<[1], [0], [0], [1], [0, 0, 1, 1], [], []>} : vector<8x16xf32>, vector<16x128xf32>, vector<8x128xf32> -> vector<8x128xf32>
    %50 = tpu.iota {dimensions = array<i32: 1>} : vector<8x128xi32>
    %c2_i32 = arith.constant 2 : i32
    %51 = vector.broadcast %c2_i32 : i32 to vector<8x128xi32>
    %52 = arith.cmpi slt, %50, %51 : vector<8x128xi32>
    %cst_42 = arith.constant 0xFF800000 : f32
    %53 = vector.broadcast %cst_42 : f32 to vector<8x128xf32>
    %54 = arith.select %52, %49, %53 : vector<8x128xi1>, vector<8x128xf32>
    %cst_43 = arith.constant dense<0xFF800000> : vector<8xf32>
    %55 = vector.multi_reduction <maximumf>, %54, %cst_43 [1] : vector<8x128xf32> to vector<8xf32>
    %56 = vector.shape_cast %55 : vector<8xf32> to vector<8x1xf32>
    %57 = vector.broadcast %56 : vector<8x1xf32> to vector<8x128xf32>
    %58 = arith.subf %54, %57 : vector<8x128xf32>
    %59 = math.exp %58 : vector<8x128xf32>
    %cst_44 = arith.constant dense<0.000000e+00> : vector<8xf32>
    %60 = vector.multi_reduction <add>, %59, %cst_44 [1] : vector<8x128xf32> to vector<8xf32>
    %61 = vector.shape_cast %60 : vector<8xf32> to vector<8x1xf32>
    %62 = vector.broadcast %61 : vector<8x1xf32> to vector<8x128xf32>
    %63 = arith.divf %59, %62 : vector<8x128xf32>
    %c0_45 = arith.constant 0 : index
    %c0_46 = arith.constant 0 : index
    %64 = vector.load %arg12[%c0_45, %c0_46] : memref<8x128xf32, #tpu.memory_space<vmem>>, vector<8x128xf32>
    tpu.vector_store %arg12[%c0_45, %c0_46], %63 {strides = array<i32>} : memref<8x128xf32, #tpu.memory_space<vmem>>, vector<8x128xf32>,
    return
  }
  func.func @transform_0(%arg0: i32) -> (i32, i32, i32) {
    %c0_i32 = arith.constant 0 : i32
    %c0_i32_0 = arith.constant 0 : i32
    %c0_i32_1 = arith.constant 0 : i32
    return %c0_i32, %arg0, %c0_i32_0 : i32, i32, i32
  }
  func.func @transform_1(%arg0: i32) -> (i32, i32, i32) {
    %c0_i32 = arith.constant 0 : i32
    %c0_i32_0 = arith.constant 0 : i32
    %c0_i32_1 = arith.constant 0 : i32
    return %c0_i32, %arg0, %c0_i32_0 : i32, i32, i32
  }
  func.func @transform_2(%arg0: i32) -> (i32, i32) {
    %c0_i32 = arith.constant 0 : i32
    %c0_i32_0 = arith.constant 0 : i32
    %c0_i32_1 = arith.constant 0 : i32
    return %c0_i32, %c0_i32_0 : i32, i32
  }
  func.func @transform_3(%arg0: i32) -> (i32, i32) {
    %c0_i32 = arith.constant 0 : i32
    %c0_i32_0 = arith.constant 0 : i32
    %c0_i32_1 = arith.constant 0 : i32
    return %c0_i32, %c0_i32_0 : i32, i32
  }
  func.func @transform_4(%arg0: i32) -> (i32, i32) {
    %c0_i32 = arith.constant 0 : i32
    %c0_i32_0 = arith.constant 0 : i32
    %c0_i32_1 = arith.constant 0 : i32
    return %c0_i32, %c0_i32_0 : i32, i32
  }
  func.func @transform_5(%arg0: i32) -> (i32, i32) {
    %c0_i32 = arith.constant 0 : i32
    %c0_i32_0 = arith.constant 0 : i32
    %c0_i32_1 = arith.constant 0 : i32
    return %c0_i32, %c0_i32_0 : i32, i32
  }
  func.func @transform_6(%arg0: i32) -> (i32, i32) {
    %c0_i32 = arith.constant 0 : i32
    %c0_i32_0 = arith.constant 0 : i32
    %c0_i32_1 = arith.constant 0 : i32
    return %c0_i32, %c0_i32_0 : i32, i32
  }
  func.func @transform_7(%arg0: i32) -> (i32, i32) {
    %c0_i32 = arith.constant 0 : i32
    %c0_i32_0 = arith.constant 0 : i32
    %c0_i32_1 = arith.constant 0 : i32
    return %c0_i32, %c0_i32_0 : i32, i32
  }
  func.func @transform_8(%arg0: i32) -> (i32, i32) {
    %c0_i32 = arith.constant 0 : i32
    %c0_i32_0 = arith.constant 0 : i32
    %c0_i32_1 = arith.constant 0 : i32
    return %c0_i32, %c0_i32_0 : i32, i32
  }
  func.func @transform_9(%arg0: i32) -> (i32, i32) {
    %c0_i32 = arith.constant 0 : i32
    %c0_i32_0 = arith.constant 0 : i32
    %c0_i32_1 = arith.constant 0 : i32
    return %c0_i32, %c0_i32_0 : i32, i32
  }
  func.func @transform_10(%arg0: i32) -> (i32, i32) {
    %c0_i32 = arith.constant 0 : i32
    %c0_i32_0 = arith.constant 0 : i32
    %c0_i32_1 = arith.constant 0 : i32
    return %c0_i32, %c0_i32_0 : i32, i32
  }
  func.func @transform_11(%arg0: i32) -> (i32, i32) {
    %c0_i32 = arith.constant 0 : i32
    %c0_i32_0 = arith.constant 0 : i32
    return %arg0, %c0_i32 : i32, i32
  }
}

</mosaic_0001>

<bundles_post_ra>
// kernel: tpu_custom_call.1
= control target key start
LH: loop header
LB: loop body
LE: loop exit
PB: predicated region body
PF: predicated region fallthrough
CT: control target
= control target key end

     0   :  { %16 = vsyncpa [#allocation3], 0  ;;  %s1769_s0 = inlined_call_operand.vmem [shape: f32[4,8,8], index: 0, kind: input, shape index: {}]   ;;  %s1770_s1 = inlined_call_operand.vmem [shape: f32[4,8,7], index: 1, kind: input, shape index: {}]   ;;  %s1771_s2 = inlined_call_operand.vmem [shape: f32[8,128], index: 2, kind: input, shape index: {}]   ;;  %s1772_s3 = inlined_call_operand.vmem [shape: f32[128,7], index: 3, kind: input, shape index: {}]   ;;  %s1773_s4 = inlined_call_operand.vmem [shape: f32[7,128], index: 4, kind: input, shape index: {}]   ;;  %s1774_s5 = inlined_call_operand.hbm [shape: f32[128,256], index: 5, kind: input, shape index: {}]   ;;  %s1775_s6 = inlined_call_operand.vmem [shape: f32[256,16], index: 6, kind: input, shape index: {}]   ;;  %s1776_s7 = inlined_call_operand.vmem [shape: f32[128,512], index: 7, kind: input, shape index: {}]   ;;  %s1777_s8 = inlined_call_operand.hbm [shape: f32[512,128], index: 8, kind: input, shape index: {}]   ;;  %s1778_s9 = inlined_call_operand.vmem [shape: f32[128,16], index: 9, kind: input, shape index: {}]   ;;  %s1779_s10 = inlined_call_operand.vmem [shape: f32[16,128], index: 10, kind: input, shape index: {}]   ;;  %s1780_s11 = inlined_call_operand.hbm [shape: f32[8,128], index: 11, kind: output, shape index: {}]  }
   0x1   :  { %17 = vsyncpa [#allocation6], 0 }
   0x2   :  { %18 = vsyncpa [#allocation4], 0  ;;  %s33_s19 = sshll.u32 %s1774_s5, 4  ;;  %s1131_s20 = smov [#allocation2]   ;;  %s34_s19 = int_to_ptr.hbm [resolvable:$true] %s33_s19 }
   0x3   :  { %s35_s21 = sshll.u32 %s1131_s20, 4  ;;  %s50_s24 = sshll.u32 %s1777_s8, 4  ;;  %s36_s21 = int_to_ptr.vmem [resolvable:$true] %s35_s21  ;;  %s51_s24 = int_to_ptr.hbm [resolvable:$true] %s50_s24 }
   0x4   :  { %s1132_s25 = smov 256   ;;  %s1133_s26 = smov 16  }
   0x5   :  { %41 = dma.hbm_to_vmem [thread:$0]  %s34_s19, 4096, %s36_s21, [#allocation3], %s1132_s25, %s1132_s25, %s1133_s26  }
   0x6   :  { %s1134_s27 = smov [#allocation5]   ;;  %s1135_s29 = smov 128  }
   0x7   :  { %s52_s28 = sshll.u32 %s1134_s27, 4  ;;  %s1136_s30 = smov 8   ;;  %s53_s28 = int_to_ptr.vmem [resolvable:$true] %s52_s28 }
   0x8   :  { %58 = dma.hbm_to_vmem [thread:$0]  %s51_s24, 8192, %s53_s28, [#allocation6], %s1135_s29, %s1135_s29, %s1136_s30  }
   0x9   :  { %1125 = dma.done.wait [#allocation3], 4096  }
   0xa   :  { %1126 = vsyncadd [#allocation3], 4294963200 }
   0xb   :  { %1127 = dma.done.wait [#allocation6], 8192  }
   0xc   :  { %1128 = vsyncadd [#allocation6], 4294959104  ;;  %vm303_vm0 = vcmask 64512   ;;  %v71_v0 = vld [vmem:[%s1771_s2] sm:$0xff]  ;;  %v87_v2 = vld [vmem:[%s1772_s3 + $0x78] sm:$0xff]  ;;  %vm391_vm1 = vcmask 1046528  }
   0xd   :  { %v299_v1 = vld [vmem:[%s1769_s0] sm:$0xff]  ;;  %331 = vmatpush.msra.mxu0 %v71_v0  ;;  %349 = vmatpush.msra.mxu1 %v87_v2  ;;  %v86_v3 = vld [vmem:[%s1772_s3 + $0x70] sm:$0xff]  ;;  %v85_v4 = vld [vmem:[%s1772_s3 + $0x68] sm:$0xff]  ;;  %vm378_vm2 = vcmask 56320   ;;  %s1138_s5 = smov 48   ;;  %s1142_s12 = smov 112  }
   0xe   :  { %1021 = vmatmul.msk.f32.vlgmr.msra.gmra.mxu0 %vm303_vm0, %v299_v1  ;;  %v84_v5 = vld [vmem:[%s1772_s3 + $0x60] sm:$0xff]  ;;  %v300_v6 = vld [vmem:[%s1769_s0 + $0x8] sm:$0xff]  ;;  %v83_v7 = vld [vmem:[%s1772_s3 + $0x58] sm:$0xff]  ;;  %vm753_vm3 = vcmask 130048   ;;  %vm755_vm4 = vcmask 261120   ;;  %vm757_vm5 = vcmask 392192  }
   0xf   :  { %350 = vmatpush.msra.mxu1 %v86_v3  ;;  %v82_v8 = vld [vmem:[%s1772_s3 + $0x50] sm:$0xff]  ;;  %v81_v9 = vld [vmem:[%s1772_s3 + $0x48] sm:$0xff]  ;;  %v80_v10 = vld [vmem:[%s1772_s3 + $0x40] sm:$0xff]  ;;  %vm759_vm6 = vcmask 523264   ;;  %vm761_vm7 = vcmask 654336   ;;  %vm763_vm8 = vcmask 785408  }
  0x10   :  { %v301_v11 = vld [vmem:[%s1769_s0 + $0x10] sm:$0xff]  ;;  %v79_v12 = vld [vmem:[%s1772_s3 + $0x38] sm:$0xff]  ;;  %v77_v14 = vld [vmem:[%s1772_s3 + $0x28] sm:$0xff]  ;;  %vm765_vm9 = vcmask 916480   ;;  %s1010_s14 = sshll.u32 %s1780_s11, 4  ;;  %s1011_s14 = int_to_ptr.hbm [resolvable:$true] %s1010_s14 }
  0x11   :  { %351 = vmatpush.msra.mxu1 %v85_v4  ;;  %v78_v13 = vld [vmem:[%s1772_s3 + $0x30] sm:$0xff]  ;;  %v76_v15 = vld [vmem:[%s1772_s3 + $0x20] sm:$0xff]  ;;  %v302_v16 = vld [vmem:[%s1769_s0 + $0x18] sm:$0xff] }
  0x12   :  { %v75_v17 = vld [vmem:[%s1772_s3 + $0x18] sm:$0xff]  ;;  %v74_v18 = vld [vmem:[%s1772_s3 + $0x10] sm:$0xff]  ;;  %v73_v19 = vld [vmem:[%s1772_s3 + $0x8] sm:$0xff] }
  0x13   :  { %352 = vmatpush.msra.mxu1 %v84_v5  ;;  %v72_v20 = vld [vmem:[%s1772_s3] sm:$0xff]  ;;  %v1285_v30 = vld [vmem:[#allocation2 + $0xf0] sm:$0xff]  ;;  %v1287_v31 = vld [vmem:[#allocation2 + $0xf8] sm:$0xff]  ;;  %s1140_s3 = smov 80  }
  0x14   :  { %v1281_v29 = vld [vmem:[%s1773_s4] sm:$0x7f]  ;;  %428 = vmatpush.msra.mxu3 %v1285_v30  ;;  %457 = vmatpush.msrb.mxu0 %v1287_v31  ;;  %v1293_v33 = vld [vmem:[#allocation2 + $0xe8] sm:$0xff]  ;;  %v1295_v34 = vld [vmem:[#allocation2 + $0xd0] sm:$0xff]  ;;  %s1141_s4 = smov 96  }
  0x15   :  { %353 = vmatpush.msra.mxu1 %v83_v7  ;;  %1025 = vmatpush.msk.msra.mxu2 %vm391_vm1, %v1281_v29  ;;  %v1289_v32 = vld [vmem:[#allocation2 + $0xe0] sm:$0xff]  ;;  %v1297_v35 = vld [vmem:[#allocation2 + $0xd8] sm:$0xff]  ;;  %v1303_v37 = vld [vmem:[#allocation2 + $0xc8] sm:$0xff] }
  0x16   :  { %1022 = vmatmul.msk.f32.gmra.mxu0 %vm303_vm0, %v300_v6  ;;  %429 = vmatpush.msra.mxu3 %v1289_v32  ;;  %v1301_v36 = vld [vmem:[#allocation2 + $0xc0] sm:$0xff]  ;;  %v111_v38 = vld [vmem:[#allocation2 + $0xb0] sm:$0xff]  ;;  %v1307_v39 = vld [vmem:[#allocation2 + $0xb8] sm:$0xff] }
  0x17   :  { %354 = vmatpush.msra.mxu1 %v82_v8  ;;  %458 = vmatpush.msrb.mxu0 %v1293_v33  ;;  %v109_v41 = vld [vmem:[#allocation2 + $0xa0] sm:$0xff]  ;;  %v1312_v42 = vld [vmem:[#allocation2 + $0xa8] sm:$0xff]  ;;  %v107_v43 = vld [vmem:[#allocation2 + $0x90] sm:$0xff] }
  0x18   :  { %430 = vmatpush.msra.mxu3 %v1295_v34  ;;  %v1315_v44 = vld [vmem:[#allocation2 + $0x98] sm:$0xff]  ;;  %v105_v45 = vld [vmem:[#allocation2 + $0x80] sm:$0xff]  ;;  %v1318_v46 = vld [vmem:[#allocation2 + $0x88] sm:$0xff] }
  0x19   :  { %355 = vmatpush.msra.mxu1 %v81_v9  ;;  %459 = vmatpush.msrb.mxu0 %v1297_v35  ;;  %v103_v47 = vld [vmem:[#allocation2 + $0x70] sm:$0xff]  ;;  %v1321_v48 = vld [vmem:[#allocation2 + $0x78] sm:$0xff]  ;;  %v101_v50 = vld [vmem:[#allocation2 + $0x60] sm:$0xff] }
  0x1a   :  { %431 = vmatpush.msra.mxu3 %v1301_v36  ;;  %v1325_v51 = vld [vmem:[#allocation2 + $0x68] sm:$0xff]  ;;  %v99_v52 = vld [vmem:[#allocation2 + $0x50] sm:$0xff]  ;;  %v1328_v53 = vld [vmem:[#allocation2 + $0x58] sm:$0xff] }
  0x1b   :  { %356 = vmatpush.msra.mxu1 %v80_v10  ;;  %460 = vmatpush.msrb.mxu0 %v1303_v37  ;;  %v97_v54 = vld [vmem:[#allocation2 + $0x40] sm:$0xff]  ;;  %v1331_v55 = vld [vmem:[#allocation2 + $0x48] sm:$0xff]  ;;  %v95_v56 = vld [vmem:[#allocation2 + $0x30] sm:$0xff] }
  0x1c   :  { %432 = vmatpush.msra.mxu3 %v111_v38  ;;  %v1334_v57 = vld [vmem:[#allocation2 + $0x38] sm:$0xff]  ;;  %v93_v59 = vld [vmem:[#allocation2 + $0x20] sm:$0xff]  ;;  %v1338_v60 = vld [vmem:[#allocation2 + $0x28] sm:$0xff] }
  0x1d   :  { %357 = vmatpush.msra.mxu1 %v79_v12  ;;  %461 = vmatpush.msrb.mxu0 %v1307_v39  ;;  %v91_v62 = vld [vmem:[#allocation2 + $0x10] sm:$0xff]  ;;  %v1343_v63 = vld [vmem:[#allocation2 + $0x18] sm:$0xff]  ;;  %v89_v0 = vld [vmem:[#allocation2] sm:$0xff] }
  0x1e   :  { %1023 = vmatmul.msk.f32.gmra.mxu0 %vm303_vm0, %v301_v11  ;;  %433 = vmatpush.msra.mxu3 %v109_v41  ;;  %v1346_v1 = vld [vmem:[#allocation2 + $0x8] sm:$0xff]  ;;  %v152_v10 = vld [vmem:[%s1775_s6 + $0xf8] sm:$0xff]  ;;  %v151_v11 = vld [vmem:[%s1775_s6 + $0xf0] sm:$0xff] }
  0x1f   :  { %358 = vmatpush.msra.mxu1 %v78_v13  ;;  %462 = vmatpush.msrb.mxu0 %v1312_v42  ;;  %v1364_v12 = vld [vmem:[%s1775_s6 + $0x78] sm:$0xff]  ;;  %v1369_v13 = vld [vmem:[%s1775_s6 + $0x70] sm:$0xff] }
  0x20   :  { %434 = vmatpush.msra.mxu3 %v107_v43  ;;  %494 = vmatpush.msrb.mxu2 %v1364_v12 }
  0x21   :  { %359 = vmatpush.msra.mxu1 %v77_v14  ;;  %463 = vmatpush.msrb.mxu0 %v1315_v44  ;;  %v150_v14 = vld [vmem:[%s1775_s6 + $0xe8] sm:$0xff] }
  0x22   :  { %435 = vmatpush.msra.mxu3 %v105_v45  ;;  %495 = vmatpush.msrb.mxu2 %v1369_v13 }
  0x23   :  { %360 = vmatpush.msra.mxu1 %v76_v15  ;;  %464 = vmatpush.msrb.mxu0 %v1318_v46  ;;  %v1378_v15 = vld [vmem:[%s1775_s6 + $0x68] sm:$0xff] }
  0x24   :  { %436 = vmatpush.msra.mxu3 %v103_v47  ;;  %496 = vmatpush.msrb.mxu2 %v1378_v15 }
  0x25   :  { %361 = vmatpush.msra.mxu1 %v75_v17  ;;  %465 = vmatpush.msrb.mxu0 %v1321_v48  ;;  %v552_v17 = vld [vmem:[%s1770_s1] sm:$0xff] }
  0x26   :  { %1024 = vmatmul.msk.f32.gmra.mxu0 %vm303_vm0, %v302_v16  ;;  %437 = vmatpush.msra.mxu3 %v101_v50  ;;  %v149_v16 = vld [vmem:[%s1775_s6 + $0xe0] sm:$0xff] }
  0x27   :  { %362 = vmatpush.msra.mxu1 %v74_v18  ;;  %466 = vmatpush.msrb.mxu0 %v1325_v51  ;;  %v1390_v18 = vld [vmem:[%s1775_s6 + $0x60] sm:$0xff] }
  0x28   :  { %438 = vmatpush.msra.mxu3 %v99_v52  ;;  %497 = vmatpush.msrb.mxu2 %v1390_v18 }
  0x29   :  { %363 = vmatpush.msra.mxu1 %v73_v19  ;;  %467 = vmatpush.msrb.mxu0 %v1328_v53  ;;  %v148_v19 = vld [vmem:[%s1775_s6 + $0xd8] sm:$0xff] }
  0x2a   :  { %439 = vmatpush.msra.mxu3 %v97_v54 }
  0x2b   :  { %364 = vmatpush.msra.mxu1 %v72_v20  ;;  %468 = vmatpush.msrb.mxu0 %v1331_v55  ;;  %v1399_v20 = vld [vmem:[%s1775_s6 + $0x58] sm:$0xff] }
  0x2c   :  { %440 = vmatpush.msra.mxu3 %v95_v56  ;;  %498 = vmatpush.msrb.mxu2 %v1399_v20 }
  0x2d   :  { %469 = vmatpush.msrb.mxu0 %v1334_v57  ;;  %523 = vmatpush.msrb.mxu1 %v152_v10 }
  0x2e   :  { %441 = vmatpush.msra.mxu3 %v93_v59 }
  0x2f   :  { %470 = vmatpush.msrb.mxu0 %v1338_v60  ;;  %524 = vmatpush.msrb.mxu1 %v151_v11 }
  0x30   :  { %442 = vmatpush.msra.mxu3 %v91_v62 }
  0x31   :  { %471 = vmatpush.msrb.mxu0 %v1343_v63  ;;  %525 = vmatpush.msrb.mxu1 %v150_v14 }
  0x32   :  { %443 = vmatpush.msra.mxu3 %v89_v0 }
  0x33   :  { %472 = vmatpush.msrb.mxu0 %v1346_v1  ;;  %526 = vmatpush.msrb.mxu1 %v149_v16 }
  0x34   :  { %1030 = vmatpush.msk.msrb.mxu3 %vm391_vm1, %v1281_v29  ;;  %v128_v29 = vld [vmem:[%s1775_s6 + $0x38] sm:$0xff] }
  0x35   :  { %601 = vmatpush.msra.mxu0 %v1285_v30  ;;  %527 = vmatpush.msrb.mxu1 %v148_v19  ;;  %v143_v30 = vld [vmem:[%s1775_s6 + $0xb0] sm:$0xff] }
  0x37   :  { %602 = vmatpush.msra.mxu0 %v1289_v32  ;;  %v127_v32 = vld [vmem:[%s1775_s6 + $0x30] sm:$0xff] }
  0x39   :  { %603 = vmatpush.msra.mxu0 %v1295_v34  ;;  %v142_v34 = vld [vmem:[%s1775_s6 + $0xa8] sm:$0xff] }
  0x3b   :  { %604 = vmatpush.msra.mxu0 %v1301_v36  ;;  %v126_v36 = vld [vmem:[%s1775_s6 + $0x28] sm:$0xff] }
  0x3d   :  { %605 = vmatpush.msra.mxu0 %v111_v38  ;;  %v141_v38 = vld [vmem:[%s1775_s6 + $0xa0] sm:$0xff] }
  0x3f   :  { %606 = vmatpush.msra.mxu0 %v109_v41  ;;  %v125_v41 = vld [vmem:[%s1775_s6 + $0x20] sm:$0xff] }
  0x41   :  { %607 = vmatpush.msra.mxu0 %v107_v43  ;;  %v140_v43 = vld [vmem:[%s1775_s6 + $0x98] sm:$0xff] }
  0x43   :  { %608 = vmatpush.msra.mxu0 %v105_v45  ;;  %v139_v45 = vld [vmem:[%s1775_s6 + $0x90] sm:$0xff] }
  0x45   :  { %609 = vmatpush.msra.mxu0 %v103_v47  ;;  %v555_v47 = vld [vmem:[%s1770_s1 + $0x18] sm:$0xff] }
  0x47   :  { %610 = vmatpush.msra.mxu0 %v101_v50  ;;  %v124_v50 = vld [vmem:[%s1775_s6 + $0x18] sm:$0xff] }
  0x49   :  { %611 = vmatpush.msra.mxu0 %v99_v52  ;;  %v137_v52 = vld [vmem:[%s1775_s6 + $0x80] sm:$0xff] }
  0x4b   :  { %612 = vmatpush.msra.mxu0 %v97_v54  ;;  %v123_v54 = vld [vmem:[%s1775_s6 + $0x10] sm:$0xff] }
  0x4d   :  { %613 = vmatpush.msra.mxu0 %v95_v56  ;;  %v122_v56 = vld [vmem:[%s1775_s6 + $0x8] sm:$0xff] }
  0x4f   :  { %614 = vmatpush.msra.mxu0 %v93_v59 }
  0x51   :  { %615 = vmatpush.msra.mxu0 %v91_v62 }
  0x53   :  { %616 = vmatpush.msra.mxu0 %v89_v0 }
  0x8b   :  { %v333_v21 = vpop.f32.mrf.mxu0 }
  0x8c   :  { %v345_v22 = vmax.f32 %v333_v21, 0.0  ;;  %v147_v21 = vld [vmem:[%s1775_s6 + $0xd0] sm:$0xff] }
  0x8d   :  { %528 = vmatpush.msrb.mxu1 %v147_v21 }
  0x8e   :  { %365 = vmatmul.f32.vlgmr.msra.gmra.mxu1 %v345_v22  ;;  %v1409_v22 = vld [vmem:[%s1775_s6 + $0x50] sm:$0xff] }
  0x8f   :  { %499 = vmatpush.msrb.mxu2 %v1409_v22 }
  0x93   :  { %v336_v23 = vpop.f32.mrf.mxu0 }
  0x94   :  { %v346_v24 = vmax.f32 %v336_v23, 0.0  ;;  %v146_v23 = vld [vmem:[%s1775_s6 + $0xc8] sm:$0xff] }
  0x95   :  { %529 = vmatpush.msrb.mxu1 %v146_v23 }
  0x96   :  { %368 = vmatmul.f32.gmra.mxu1 %v346_v24  ;;  %v1418_v24 = vld [vmem:[%s1775_s6 + $0x48] sm:$0xff] }
  0x97   :  { %500 = vmatpush.msrb.mxu2 %v1418_v24 }
  0x9b   :  { %v339_v25 = vpop.f32.mrf.mxu0 }
  0x9c   :  { %v347_v26 = vmax.f32 %v339_v25, 0.0  ;;  %v145_v25 = vld [vmem:[%s1775_s6 + $0xc0] sm:$0xff] }
  0x9d   :  { %530 = vmatpush.msrb.mxu1 %v145_v25 }
  0x9e   :  { %371 = vmatmul.f32.gmra.mxu1 %v347_v26  ;;  %v553_v26 = vld [vmem:[%s1770_s1 + $0x8] sm:$0xff] }
  0xa3   :  { %v342_v27 = vpop.f32.mrf.mxu0 }
  0xa4   :  { %v348_v28 = vmax.f32 %v342_v27, 0.0  ;;  %v129_v27 = vld [vmem:[%s1775_s6 + $0x40] sm:$0xff] }
  0xa5   :  { %501 = vmatpush.msrb.mxu2 %v129_v27 }
  0xa6   :  { %374 = vmatmul.f32.gmra.mxu1 %v348_v28  ;;  %v144_v28 = vld [vmem:[%s1775_s6 + $0xb8] sm:$0xff] }
  0xa7   :  { %531 = vmatpush.msrb.mxu1 %v144_v28  ;;  %502 = vmatpush.msrb.mxu2 %v128_v29 }
  0xa9   :  { %532 = vmatpush.msrb.mxu1 %v143_v30  ;;  %503 = vmatpush.msrb.mxu2 %v127_v32 }
  0xab   :  { %533 = vmatpush.msrb.mxu1 %v142_v34  ;;  %504 = vmatpush.msrb.mxu2 %v126_v36 }
  0xad   :  { %534 = vmatpush.msrb.mxu1 %v141_v38  ;;  %505 = vmatpush.msrb.mxu2 %v125_v41 }
  0xaf   :  { %535 = vmatpush.msrb.mxu1 %v140_v43  ;;  %506 = vmatpush.msrb.mxu2 %v124_v50 }
  0xb1   :  { %536 = vmatpush.msrb.mxu1 %v139_v45  ;;  %507 = vmatpush.msrb.mxu2 %v123_v54 }
  0xb3   :  { %508 = vmatpush.msrb.mxu2 %v122_v56 }
 0x10b   :  { %v366_v40 = vpop.f32.mrf.mxu1 }
 0x10c   :  { %1026 = vmatmul.msk.f32.vlgmr.msra.gmra.mxu2 %vm378_vm2, %v366_v40  ;;  %v554_v40 = vld [vmem:[%s1770_s1 + $0x10] sm:$0xff] }
 0x113   :  { %v369_v49 = vpop.f32.mrf.mxu1 }
 0x114   :  { %1027 = vmatmul.msk.f32.gmra.mxu2 %vm378_vm2, %v369_v49  ;;  %v138_v49 = vld [vmem:[%s1775_s6 + $0x88] sm:$0xff] }
 0x115   :  { %537 = vmatpush.msrb.mxu1 %v138_v49 }
 0x117   :  { %538 = vmatpush.msrb.mxu1 %v137_v52 }
 0x119   :  { %667 = vmatpush.msra.mxu1 %v1364_v12 }
 0x11b   :  { %v372_v58 = vpop.f32.mrf.mxu1  ;;  %668 = vmatpush.msra.mxu1 %v1369_v13 }
 0x11c   :  { %1028 = vmatmul.msk.f32.gmra.mxu2 %vm378_vm2, %v372_v58  ;;  %v121_v58 = vld [vmem:[%s1775_s6] sm:$0xff]  ;;  %s1137_s6 = smov 32  }
 0x11d   :  { %669 = vmatpush.msra.mxu1 %v1378_v15  ;;  %509 = vmatpush.msrb.mxu2 %v121_v58 }
 0x11f   :  { %630 = vmatpush.msra.mxu2 %v1287_v31  ;;  %670 = vmatpush.msra.mxu1 %v1390_v18 }
 0x121   :  { %631 = vmatpush.msra.mxu2 %v1293_v33  ;;  %671 = vmatpush.msra.mxu1 %v1399_v20 }
 0x123   :  { %v375_v61 = vpop.f32.mrf.mxu1  ;;  %632 = vmatpush.msra.mxu2 %v1297_v35  ;;  %672 = vmatpush.msra.mxu1 %v1409_v22 }
 0x124   :  { %1029 = vmatmul.msk.f32.gmra.mxu2 %vm378_vm2, %v375_v61 }
 0x125   :  { %633 = vmatpush.msra.mxu2 %v1303_v37  ;;  %673 = vmatpush.msra.mxu1 %v1418_v24 }
 0x127   :  { %634 = vmatpush.msra.mxu2 %v1307_v39  ;;  %674 = vmatpush.msra.mxu1 %v129_v27 }
 0x129   :  { %635 = vmatpush.msra.mxu2 %v1312_v42  ;;  %675 = vmatpush.msra.mxu1 %v128_v29 }
 0x12b   :  { %636 = vmatpush.msra.mxu2 %v1315_v44  ;;  %676 = vmatpush.msra.mxu1 %v127_v32 }
 0x12d   :  { %637 = vmatpush.msra.mxu2 %v1318_v46  ;;  %677 = vmatpush.msra.mxu1 %v126_v36 }
 0x12f   :  { %638 = vmatpush.msra.mxu2 %v1321_v48  ;;  %678 = vmatpush.msra.mxu1 %v125_v41 }
 0x131   :  { %639 = vmatpush.msra.mxu2 %v1325_v51  ;;  %679 = vmatpush.msra.mxu1 %v124_v50 }
 0x133   :  { %640 = vmatpush.msra.mxu2 %v1328_v53  ;;  %680 = vmatpush.msra.mxu1 %v123_v54 }
 0x135   :  { %641 = vmatpush.msra.mxu2 %v1331_v55  ;;  %681 = vmatpush.msra.mxu1 %v122_v56 }
 0x137   :  { %642 = vmatpush.msra.mxu2 %v1334_v57  ;;  %682 = vmatpush.msra.mxu1 %v121_v58 }
 0x139   :  { %643 = vmatpush.msra.mxu2 %v1338_v60 }
 0x13b   :  { %644 = vmatpush.msra.mxu2 %v1343_v63 }
 0x13d   :  { %645 = vmatpush.msra.mxu2 %v1346_v1 }
 0x18f   :  { %v412_v2 = vpop.f32.mrf.mxu2 }
 0x190   :  { %v424_v3 = vmax.f32 %v412_v2, 0.0 }
 0x192   :  { %444 = vmatmul.f32.vlgmr.msra.gmra.mxu3 %v424_v3  ;;  %473 = vmatmul.f32.vlgmr.msrb.gmra.mxu0 %v424_v3 }
 0x193   :  { %696 = vmatpush.msra.mxu3 %v152_v10 }
 0x195   :  { %697 = vmatpush.msra.mxu3 %v151_v11 }
 0x197   :  { %v415_v4 = vpop.f32.mrf.mxu2  ;;  %698 = vmatpush.msra.mxu3 %v150_v14 }
 0x198   :  { %v425_v5 = vmax.f32 %v415_v4, 0.0 }
 0x199   :  { %699 = vmatpush.msra.mxu3 %v149_v16 }
 0x19a   :  { %447 = vmatmul.f32.gmra.mxu3 %v425_v5  ;;  %476 = vmatmul.f32.gmra.mxu0 %v425_v5 }
 0x19b   :  { %700 = vmatpush.msra.mxu3 %v148_v19 }
 0x19d   :  { %701 = vmatpush.msra.mxu3 %v147_v21 }
 0x19f   :  { %v418_v6 = vpop.f32.mrf.mxu2  ;;  %702 = vmatpush.msra.mxu3 %v146_v23 }
 0x1a0   :  { %v426_v7 = vmax.f32 %v418_v6, 0.0 }
 0x1a1   :  { %703 = vmatpush.msra.mxu3 %v145_v25 }
 0x1a2   :  { %450 = vmatmul.f32.gmra.mxu3 %v426_v7  ;;  %479 = vmatmul.f32.gmra.mxu0 %v426_v7 }
 0x1a3   :  { %704 = vmatpush.msra.mxu3 %v144_v28 }
 0x1a5   :  { %705 = vmatpush.msra.mxu3 %v143_v30 }
 0x1a7   :  { %v421_v8 = vpop.f32.mrf.mxu2  ;;  %706 = vmatpush.msra.mxu3 %v142_v34 }
 0x1a8   :  { %v427_v9 = vmax.f32 %v421_v8, 0.0 }
 0x1a9   :  { %707 = vmatpush.msra.mxu3 %v141_v38 }
 0x1aa   :  { %453 = vmatmul.f32.gmra.mxu3 %v427_v9  ;;  %482 = vmatmul.f32.gmra.mxu0 %v427_v9 }
 0x1ab   :  { %708 = vmatpush.msra.mxu3 %v140_v43 }
 0x1ad   :  { %709 = vmatpush.msra.mxu3 %v139_v45 }
 0x1af   :  { %710 = vmatpush.msra.mxu3 %v138_v49 }
 0x1b1   :  { %711 = vmatpush.msra.mxu3 %v137_v52 }
 0x1b2   :  { %1031 = vmatmul.msk.f32.vlgmr.msrb.gmra.mxu3 %vm378_vm2, %v552_v17 }
 0x1ba   :  { %1032 = vmatmul.msk.f32.gmra.mxu3 %vm378_vm2, %v553_v26 }
 0x1c2   :  { %1033 = vmatmul.msk.f32.gmra.mxu3 %vm378_vm2, %v554_v40 }
 0x1ca   :  { %1034 = vmatmul.msk.f32.gmra.mxu3 %vm378_vm2, %v555_v47 }
 0x20f   :  { %v474_v31 = vpop.f32.mrf.mxu0 }
 0x210   :  { %v487_v33 = vmax.f32 %v474_v31, 0.0  ;;  %v214_v31 = vld [vmem:[%s1776_s7 + $0x1e8] sm:$0xff] }
 0x212   :  { %539 = vmatmul.f32.vlgmr.msrb.gmra.mxu1 %v487_v33  ;;  %v213_v33 = vld [vmem:[%s1776_s7 + $0x1e0] sm:$0xff] }
 0x213   :  { %767 = vmatpush.msrb.mxu0 %v213_v33  ;;  %v232_v33 = vld [vmem:[#allocation5 + $0x78] sm:$0xff] }
 0x215   :  { %v445_v35 = vpop.f32.mrf.mxu3 }
 0x216   :  { %v486_v37 = vmax.f32 %v445_v35, 0.0  ;;  %v215_v35 = vld [vmem:[%s1776_s7 + $0x1f0] sm:$0xff] }
 0x217   :  { %v477_v39 = vpop.f32.mrf.mxu0  ;;  %807 = vmatpush.msrb.mxu1 %v215_v35  ;;  %v264_v35 = vld [vmem:[#allocation5 + $0x178] sm:$0xff] }
 0x218   :  { %v489_v42 = vmax.f32 %v477_v39, 0.0  ;;  %510 = vmatmul.f32.vlgmr.msrb.gmra.mxu2 %v486_v37  ;;  %v216_v37 = vld [vmem:[%s1776_s7 + $0x1f8] sm:$0xff]  ;;  %v210_v39 = vld [vmem:[%s1776_s7 + $0x1c8] sm:$0xff] }
 0x219   :  { %787 = vmatpush.msrb.mxu2 %v214_v31  ;;  %827 = vmatpush.msrb.mxu3 %v216_v37  ;;  %v156_v31 = vld [vmem:[%s1776_s7 + $0x18] sm:$0xff]  ;;  %v231_v37 = vld [vmem:[#allocation5 + $0x70] sm:$0xff] }
 0x21a   :  { %542 = vmatmul.f32.gmra.mxu1 %v489_v42  ;;  %v209_v42 = vld [vmem:[%s1776_s7 + $0x1c0] sm:$0xff] }
 0x21b   :  { %788 = vmatpush.msrb.mxu2 %v210_v39  ;;  %768 = vmatpush.msrb.mxu0 %v209_v42  ;;  %v263_v39 = vld [vmem:[#allocation5 + $0x170] sm:$0xff]  ;;  %v230_v42 = vld [vmem:[#allocation5 + $0x68] sm:$0xff] }
 0x21d   :  { %v448_v44 = vpop.f32.mrf.mxu3 }
 0x21e   :  { %v488_v46 = vmax.f32 %v448_v44, 0.0  ;;  %v211_v44 = vld [vmem:[%s1776_s7 + $0x1d0] sm:$0xff] }
 0x21f   :  { %v480_v48 = vpop.f32.mrf.mxu0  ;;  %808 = vmatpush.msrb.mxu1 %v211_v44  ;;  %v262_v44 = vld [vmem:[#allocation5 + $0x168] sm:$0xff] }
 0x220   :  { %v491_v51 = vmax.f32 %v480_v48, 0.0  ;;  %513 = vmatmul.f32.gmra.mxu2 %v488_v46  ;;  %v212_v46 = vld [vmem:[%s1776_s7 + $0x1d8] sm:$0xff]  ;;  %v206_v48 = vld [vmem:[%s1776_s7 + $0x1a8] sm:$0xff] }
 0x221   :  { %828 = vmatpush.msrb.mxu3 %v212_v46  ;;  %789 = vmatpush.msrb.mxu2 %v206_v48  ;;  %v248_v46 = vld [vmem:[#allocation5 + $0xf8] sm:$0xff] }
 0x222   :  { %545 = vmatmul.f32.gmra.mxu1 %v491_v51  ;;  %v205_v51 = vld [vmem:[%s1776_s7 + $0x1a0] sm:$0xff]  ;;  %v280_v48 = vld [vmem:[#allocation5 + $0x1f8] sm:$0xff] }
 0x223   :  { %769 = vmatpush.msrb.mxu0 %v205_v51  ;;  %v247_v51 = vld [vmem:[#allocation5 + $0xf0] sm:$0xff] }
 0x225   :  { %v451_v53 = vpop.f32.mrf.mxu3 }
 0x226   :  { %v490_v55 = vmax.f32 %v451_v53, 0.0  ;;  %v207_v53 = vld [vmem:[%s1776_s7 + $0x1b0] sm:$0xff] }
 0x227   :  { %v483_v57 = vpop.f32.mrf.mxu0  ;;  %809 = vmatpush.msrb.mxu1 %v207_v53  ;;  %v229_v53 = vld [vmem:[#allocation5 + $0x60] sm:$0xff] }
 0x228   :  { %v493_v59 = vmax.f32 %v483_v57, 0.0  ;;  %516 = vmatmul.f32.gmra.mxu2 %v490_v55  ;;  %v208_v55 = vld [vmem:[%s1776_s7 + $0x1b8] sm:$0xff]  ;;  %v202_v57 = vld [vmem:[%s1776_s7 + $0x188] sm:$0xff] }
 0x229   :  { %829 = vmatpush.msrb.mxu3 %v208_v55  ;;  %790 = vmatpush.msrb.mxu2 %v202_v57  ;;  %v261_v55 = vld [vmem:[#allocation5 + $0x160] sm:$0xff]  ;;  %v279_v57 = vld [vmem:[#allocation5 + $0x1f0] sm:$0xff] }
 0x22a   :  { %548 = vmatmul.f32.gmra.mxu1 %v493_v59  ;;  %v201_v59 = vld [vmem:[%s1776_s7 + $0x180] sm:$0xff] }
 0x22b   :  { %770 = vmatpush.msrb.mxu0 %v201_v59  ;;  %v246_v59 = vld [vmem:[#allocation5 + $0xe8] sm:$0xff] }
 0x22d   :  { %v454_v60 = vpop.f32.mrf.mxu3 }
 0x22e   :  { %v492_v61 = vmax.f32 %v454_v60, 0.0  ;;  %v203_v60 = vld [vmem:[%s1776_s7 + $0x190] sm:$0xff] }
 0x22f   :  { %810 = vmatpush.msrb.mxu1 %v203_v60  ;;  %v278_v60 = vld [vmem:[#allocation5 + $0x1e8] sm:$0xff] }
 0x230   :  { %519 = vmatmul.f32.gmra.mxu2 %v492_v61  ;;  %v204_v61 = vld [vmem:[%s1776_s7 + $0x198] sm:$0xff] }
 0x231   :  { %830 = vmatpush.msrb.mxu3 %v204_v61  ;;  %v228_v61 = vld [vmem:[#allocation5 + $0x58] sm:$0xff] }
 0x235   :  { %v585_v62 = vpop.f32.mrf.mxu3 }
 0x236   :  { %v597_v63 = vmax.f32 %v585_v62, 0.0  ;;  %v198_v62 = vld [vmem:[%s1776_s7 + $0x168] sm:$0xff] }
 0x237   :  { %791 = vmatpush.msrb.mxu2 %v198_v62  ;;  %v260_v62 = vld [vmem:[#allocation5 + $0x158] sm:$0xff] }
 0x238   :  { %617 = vmatmul.f32.vlgmr.msra.gmra.mxu0 %v597_v63  ;;  %646 = vmatmul.f32.vlgmr.msra.gmra.mxu2 %v597_v63  ;;  %v197_v63 = vld [vmem:[%s1776_s7 + $0x160] sm:$0xff] }
 0x239   :  { %771 = vmatpush.msrb.mxu0 %v197_v63  ;;  %v245_v63 = vld [vmem:[#allocation5 + $0xe0] sm:$0xff] }
 0x23d   :  { %v588_v0 = vpop.f32.mrf.mxu3 }
 0x23e   :  { %v598_v1 = vmax.f32 %v588_v0, 0.0  ;;  %v199_v0 = vld [vmem:[%s1776_s7 + $0x170] sm:$0xff] }
 0x23f   :  { %811 = vmatpush.msrb.mxu1 %v199_v0  ;;  %v277_v0 = vld [vmem:[#allocation5 + $0x1e0] sm:$0xff] }
 0x240   :  { %620 = vmatmul.f32.gmra.mxu0 %v598_v1  ;;  %649 = vmatmul.f32.gmra.mxu2 %v598_v1  ;;  %v200_v1 = vld [vmem:[%s1776_s7 + $0x178] sm:$0xff] }
 0x241   :  { %831 = vmatpush.msrb.mxu3 %v200_v1 }
 0x245   :  { %v591_v2 = vpop.f32.mrf.mxu3 }
 0x246   :  { %v599_v3 = vmax.f32 %v591_v2, 0.0  ;;  %v194_v2 = vld [vmem:[%s1776_s7 + $0x148] sm:$0xff] }
 0x247   :  { %792 = vmatpush.msrb.mxu2 %v194_v2  ;;  %v227_v2 = vld [vmem:[#allocation5 + $0x50] sm:$0xff] }
 0x248   :  { %623 = vmatmul.f32.gmra.mxu0 %v599_v3  ;;  %652 = vmatmul.f32.gmra.mxu2 %v599_v3  ;;  %v193_v3 = vld [vmem:[%s1776_s7 + $0x140] sm:$0xff] }
 0x249   :  { %772 = vmatpush.msrb.mxu0 %v193_v3  ;;  %v259_v3 = vld [vmem:[#allocation5 + $0x150] sm:$0xff] }
 0x24d   :  { %v594_v4 = vpop.f32.mrf.mxu3 }
 0x24e   :  { %v600_v5 = vmax.f32 %v594_v4, 0.0  ;;  %v195_v4 = vld [vmem:[%s1776_s7 + $0x150] sm:$0xff] }
 0x24f   :  { %812 = vmatpush.msrb.mxu1 %v195_v4  ;;  %v244_v4 = vld [vmem:[#allocation5 + $0xd8] sm:$0xff] }
 0x250   :  { %626 = vmatmul.f32.gmra.mxu0 %v600_v5  ;;  %655 = vmatmul.f32.gmra.mxu2 %v600_v5  ;;  %v196_v5 = vld [vmem:[%s1776_s7 + $0x158] sm:$0xff] }
 0x251   :  { %832 = vmatpush.msrb.mxu3 %v196_v5  ;;  %v276_v5 = vld [vmem:[#allocation5 + $0x1d8] sm:$0xff] }
 0x28f   :  { %v540_v6 = vpop.f32.mrf.mxu1 }
 0x297   :  { %v543_v9 = vpop.f32.mrf.mxu1 }
 0x29b   :  { %v511_v7 = vpop.f32.mrf.mxu2 }
 0x29c   :  { %v1511_v8 = vadd.f32 %v540_v6, %v511_v7  ;;  %v190_v6 = vld [vmem:[%s1776_s7 + $0x128] sm:$0xff]  ;;  %v189_v7 = vld [vmem:[%s1776_s7 + $0x120] sm:$0xff] }
 0x29d   :  { %793 = vmatpush.msrb.mxu2 %v190_v6  ;;  %773 = vmatpush.msrb.mxu0 %v189_v7  ;;  %v226_v6 = vld [vmem:[#allocation5 + $0x48] sm:$0xff] }
 0x29e   :  { %v258_v7 = vld [vmem:[#allocation5 + $0x148] sm:$0xff] }
 0x29f   :  { %v546_v12 = vpop.f32.mrf.mxu1 }
 0x2a3   :  { %v514_v10 = vpop.f32.mrf.mxu2 }
 0x2a4   :  { %v544_v11 = vadd.f32 %v543_v9, %v514_v10  ;;  %v191_v9 = vld [vmem:[%s1776_s7 + $0x130] sm:$0xff]  ;;  %v192_v10 = vld [vmem:[%s1776_s7 + $0x138] sm:$0xff] }
 0x2a5   :  { %813 = vmatpush.msrb.mxu1 %v191_v9  ;;  %833 = vmatpush.msrb.mxu3 %v192_v10  ;;  %v243_v9 = vld [vmem:[#allocation5 + $0xd0] sm:$0xff] }
 0x2a6   :  { %726 = vrot.lane.b32.xlu0 %v544_v11, %s1133_s26  ;;  %s1139_s26 = smov 64   ;;  %v186_v11 = vld [vmem:[%s1776_s7 + $0x108] sm:$0xff]  ;;  %v275_v10 = vld [vmem:[#allocation5 + $0x1d0] sm:$0xff] }
 0x2a7   :  { %v549_v15 = vpop.f32.mrf.mxu1  ;;  %794 = vmatpush.msrb.mxu2 %v186_v11 }
 0x2ab   :  { %v517_v13 = vpop.f32.mrf.mxu2 }
 0x2ac   :  { %v547_v14 = vadd.f32 %v546_v12, %v517_v13  ;;  %v185_v12 = vld [vmem:[%s1776_s7 + $0x100] sm:$0xff]  ;;  %v187_v13 = vld [vmem:[%s1776_s7 + $0x110] sm:$0xff] }
 0x2ad   :  { %774 = vmatpush.msrb.mxu0 %v185_v12  ;;  %814 = vmatpush.msrb.mxu1 %v187_v13  ;;  %v225_v12 = vld [vmem:[#allocation5 + $0x40] sm:$0xff] }
 0x2ae   :  { %730 = vrot.lane.b32.xlu0 %v547_v14, %s1137_s6  ;;  %v188_v14 = vld [vmem:[%s1776_s7 + $0x118] sm:$0xff]  ;;  %v257_v13 = vld [vmem:[#allocation5 + $0x140] sm:$0xff] }
 0x2af   :  { %834 = vmatpush.msrb.mxu3 %v188_v14  ;;  %v242_v14 = vld [vmem:[#allocation5 + $0xc8] sm:$0xff] }
 0x2b3   :  { %v520_v16 = vpop.f32.mrf.mxu2 }
 0x2b4   :  { %v550_v17 = vadd.f32 %v549_v15, %v520_v16  ;;  %v182_v15 = vld [vmem:[%s1776_s7 + $0xe8] sm:$0xff]  ;;  %v181_v16 = vld [vmem:[%s1776_s7 + $0xe0] sm:$0xff] }
 0x2b5   :  { %v618_v18 = vpop.f32.mrf.mxu0  ;;  %795 = vmatpush.msrb.mxu2 %v182_v15  ;;  %775 = vmatpush.msrb.mxu0 %v181_v16  ;;  %v274_v15 = vld [vmem:[#allocation5 + $0x1c8] sm:$0xff]  ;;  %v224_v16 = vld [vmem:[#allocation5 + $0x38] sm:$0xff] }
 0x2b6   :  { %v659_v19 = vmax.f32 %v618_v18, 0.0  ;;  %734 = vrot.lane.b32.xlu1 %v550_v17, %s1138_s5  ;;  %v183_v17 = vld [vmem:[%s1776_s7 + $0xf0] sm:$0xff]  ;;  %v184_v18 = vld [vmem:[%s1776_s7 + $0xf8] sm:$0xff] }
 0x2b7   :  { %815 = vmatpush.msrb.mxu1 %v183_v17  ;;  %835 = vmatpush.msrb.mxu3 %v184_v18  ;;  %v256_v17 = vld [vmem:[#allocation5 + $0x138] sm:$0xff]  ;;  %v241_v18 = vld [vmem:[#allocation5 + $0xc0] sm:$0xff] }
 0x2b8   :  { %683 = vmatmul.f32.vlgmr.msra.gmra.mxu1 %v659_v19  ;;  %v178_v19 = vld [vmem:[%s1776_s7 + $0xc8] sm:$0xff] }
 0x2b9   :  { %796 = vmatpush.msrb.mxu2 %v178_v19  ;;  %v273_v19 = vld [vmem:[#allocation5 + $0x1c0] sm:$0xff] }
 0x2bb   :  { %v647_v20 = vpop.f32.mrf.mxu2 }
 0x2bc   :  { %v660_v21 = vmax.f32 %v647_v20, 0.0  ;;  %v177_v20 = vld [vmem:[%s1776_s7 + $0xc0] sm:$0xff] }
 0x2bd   :  { %v621_v22 = vpop.f32.mrf.mxu0  ;;  %776 = vmatpush.msrb.mxu0 %v177_v20  ;;  %v223_v20 = vld [vmem:[#allocation5 + $0x30] sm:$0xff] }
 0x2be   :  { %v661_v23 = vmax.f32 %v621_v22, 0.0  ;;  %712 = vmatmul.f32.vlgmr.msra.gmra.mxu3 %v660_v21  ;;  %v179_v21 = vld [vmem:[%s1776_s7 + $0xd0] sm:$0xff]  ;;  %v180_v22 = vld [vmem:[%s1776_s7 + $0xd8] sm:$0xff] }
 0x2bf   :  { %816 = vmatpush.msrb.mxu1 %v179_v21  ;;  %836 = vmatpush.msrb.mxu3 %v180_v22  ;;  %v255_v21 = vld [vmem:[#allocation5 + $0x130] sm:$0xff]  ;;  %v240_v22 = vld [vmem:[#allocation5 + $0xb8] sm:$0xff] }
 0x2c0   :  { %686 = vmatmul.f32.gmra.mxu1 %v661_v23  ;;  %v174_v23 = vld [vmem:[%s1776_s7 + $0xa8] sm:$0xff] }
 0x2c1   :  { %797 = vmatpush.msrb.mxu2 %v174_v23  ;;  %v272_v23 = vld [vmem:[#allocation5 + $0x1b8] sm:$0xff] }
 0x2c3   :  { %v650_v24 = vpop.f32.mrf.mxu2 }
 0x2c4   :  { %v662_v25 = vmax.f32 %v650_v24, 0.0  ;;  %v173_v24 = vld [vmem:[%s1776_s7 + $0xa0] sm:$0xff] }
 0x2c5   :  { %v624_v26 = vpop.f32.mrf.mxu0  ;;  %777 = vmatpush.msrb.mxu0 %v173_v24 }
 0x2c6   :  { %v663_v27 = vmax.f32 %v624_v26, 0.0  ;;  %715 = vmatmul.f32.gmra.mxu3 %v662_v25  ;;  %v175_v25 = vld [vmem:[%s1776_s7 + $0xb0] sm:$0xff]  ;;  %v176_v26 = vld [vmem:[%s1776_s7 + $0xb8] sm:$0xff] }
 0x2c7   :  { %817 = vmatpush.msrb.mxu1 %v175_v25  ;;  %837 = vmatpush.msrb.mxu3 %v176_v26  ;;  %v222_v26 = vld [vmem:[#allocation5 + $0x28] sm:$0xff] }
 0x2c8   :  { %689 = vmatmul.f32.gmra.mxu1 %v663_v27  ;;  %v170_v27 = vld [vmem:[%s1776_s7 + $0x88] sm:$0xff] }
 0x2c9   :  { %798 = vmatpush.msrb.mxu2 %v170_v27  ;;  %v254_v27 = vld [vmem:[#allocation5 + $0x128] sm:$0xff] }
 0x2cb   :  { %v653_v28 = vpop.f32.mrf.mxu2 }
 0x2cc   :  { %v664_v29 = vmax.f32 %v653_v28, 0.0  ;;  %v169_v28 = vld [vmem:[%s1776_s7 + $0x80] sm:$0xff] }
 0x2cd   :  { %v627_v30 = vpop.f32.mrf.mxu0  ;;  %778 = vmatpush.msrb.mxu0 %v169_v28  ;;  %v239_v28 = vld [vmem:[#allocation5 + $0xb0] sm:$0xff] }
 0x2ce   :  { %v665_v32 = vmax.f32 %v627_v30, 0.0  ;;  %718 = vmatmul.f32.gmra.mxu3 %v664_v29  ;;  %v171_v29 = vld [vmem:[%s1776_s7 + $0x90] sm:$0xff]  ;;  %v172_v30 = vld [vmem:[%s1776_s7 + $0x98] sm:$0xff] }
 0x2cf   :  { %818 = vmatpush.msrb.mxu1 %v171_v29  ;;  %838 = vmatpush.msrb.mxu3 %v172_v30  ;;  %v271_v29 = vld [vmem:[#allocation5 + $0x1b0] sm:$0xff] }
 0x2d0   :  { %692 = vmatmul.f32.gmra.mxu1 %v665_v32  ;;  %v166_v32 = vld [vmem:[%s1776_s7 + $0x68] sm:$0xff] }
 0x2d1   :  { %799 = vmatpush.msrb.mxu2 %v166_v32 }
 0x2d3   :  { %v656_v34 = vpop.f32.mrf.mxu2 }
 0x2d4   :  { %v666_v36 = vmax.f32 %v656_v34, 0.0  ;;  %v165_v34 = vld [vmem:[%s1776_s7 + $0x60] sm:$0xff] }
 0x2d5   :  { %779 = vmatpush.msrb.mxu0 %v165_v34  ;;  %v221_v34 = vld [vmem:[#allocation5 + $0x20] sm:$0xff] }
 0x2d6   :  { %721 = vmatmul.f32.gmra.mxu3 %v666_v36  ;;  %v167_v36 = vld [vmem:[%s1776_s7 + $0x70] sm:$0xff] }
 0x2d7   :  { %819 = vmatpush.msrb.mxu1 %v167_v36  ;;  %v253_v36 = vld [vmem:[#allocation5 + $0x120] sm:$0xff] }
 0x318   :  { %v727_v1 = vpop.permute.xlu0 %726 }
 0x319   :  { %v754_v30 = vsel %vm753_vm3, %v1511_v8, %v727_v1  ;;  %v292_v1 = vld [vmem:[%s1778_s9 + $0x58] sm:$0xff] }
 0x320   :  { %v731_v24 = vpop.permute.xlu0 %730 }
 0x328   :  { %v735_v11 = vpop.permute.xlu1 %734 }
 0x335   :  { %v684_v38 = vpop.f32.mrf.mxu1 }
 0x33d   :  { %v687_v43 = vpop.f32.mrf.mxu1 }
 0x341   :  { %v713_v40 = vpop.f32.mrf.mxu3 }
 0x342   :  { %v714_v41 = vadd.f32 %v713_v40, %v684_v38  ;;  %v168_v38 = vld [vmem:[%s1776_s7 + $0x78] sm:$0xff]  ;;  %v162_v40 = vld [vmem:[%s1776_s7 + $0x48] sm:$0xff] }
 0x343   :  { %839 = vmatpush.msrb.mxu3 %v168_v38  ;;  %800 = vmatpush.msrb.mxu2 %v162_v40  ;;  %v756_v38 = vsel %vm755_vm4, %v754_v30, %v731_v24  ;;  %v238_v40 = vld [vmem:[#allocation5 + $0xa8] sm:$0xff] }
 0x344   :  { %738 = vrot.lane.b32.xlu1 %v714_v41, %s1139_s26  ;;  %v161_v41 = vld [vmem:[%s1776_s7 + $0x40] sm:$0xff] }
 0x345   :  { %v690_v49 = vpop.f32.mrf.mxu1  ;;  %780 = vmatpush.msrb.mxu0 %v161_v41  ;;  %v270_v41 = vld [vmem:[#allocation5 + $0x1a8] sm:$0xff] }
 0x349   :  { %v716_v45 = vpop.f32.mrf.mxu3 }
 0x34a   :  { %v717_v47 = vadd.f32 %v716_v45, %v687_v43  ;;  %v163_v43 = vld [vmem:[%s1776_s7 + $0x50] sm:$0xff]  ;;  %v164_v45 = vld [vmem:[%s1776_s7 + $0x58] sm:$0xff] }
 0x34b   :  { %820 = vmatpush.msrb.mxu1 %v163_v43  ;;  %840 = vmatpush.msrb.mxu3 %v164_v45  ;;  %v758_v43 = vsel %vm757_vm5, %v756_v38, %v735_v11  ;;  %v220_v45 = vld [vmem:[#allocation5 + $0x18] sm:$0xff]  ;;  %v291_v11 = vld [vmem:[%s1778_s9 + $0x50] sm:$0xff]  ;;  %v976_v38 = vlaneseq }
 0x34c   :  { %742 = vrot.lane.b32.xlu2 %v717_v47, %s1140_s3  ;;  %v158_v47 = vld [vmem:[%s1776_s7 + $0x28] sm:$0xff] }
 0x34d   :  { %v693_v54 = vpop.f32.mrf.mxu1  ;;  %801 = vmatpush.msrb.mxu2 %v158_v47  ;;  %v252_v47 = vld [vmem:[#allocation5 + $0x118] sm:$0xff] }
 0x351   :  { %v719_v50 = vpop.f32.mrf.mxu3 }
 0x352   :  { %v720_v52 = vadd.f32 %v719_v50, %v690_v49  ;;  %v157_v49 = vld [vmem:[%s1776_s7 + $0x20] sm:$0xff]  ;;  %v159_v50 = vld [vmem:[%s1776_s7 + $0x30] sm:$0xff] }
 0x353   :  { %781 = vmatpush.msrb.mxu0 %v157_v49  ;;  %821 = vmatpush.msrb.mxu1 %v159_v50  ;;  %v219_v49 = vld [vmem:[#allocation5 + $0x10] sm:$0xff] }
 0x354   :  { %746 = vrot.lane.b32.xlu2 %v720_v52, %s1141_s4  ;;  %v160_v52 = vld [vmem:[%s1776_s7 + $0x38] sm:$0xff]  ;;  %v251_v50 = vld [vmem:[#allocation5 + $0x110] sm:$0xff] }
 0x355   :  { %841 = vmatpush.msrb.mxu3 %v160_v52 }
 0x357   :  { %842 = vmatpush.msrb.mxu3 %v156_v31 }
 0x359   :  { %v722_v56 = vpop.f32.mrf.mxu3  ;;  %911 = vmatpush.msra.mxu3 %v280_v48  ;;  %v268_v48 = vld [vmem:[#allocation5 + $0x198] sm:$0xff] }
 0x35a   :  { %v723_v58 = vadd.f32 %v722_v56, %v693_v54  ;;  %v154_v54 = vld [vmem:[%s1776_s7 + $0x8] sm:$0xff]  ;;  %v153_v56 = vld [vmem:[%s1776_s7] sm:$0xff] }
 0x35b   :  { %802 = vmatpush.msrb.mxu2 %v154_v54  ;;  %782 = vmatpush.msrb.mxu0 %v153_v56 }
 0x35c   :  { %750 = vrot.lane.b32.xlu0 %v723_v58, %s1142_s12  ;;  %v155_v58 = vld [vmem:[%s1776_s7 + $0x10] sm:$0xff]  ;;  %912 = vmatpush.msra.mxu3 %v279_v57  ;;  %v266_v57 = vld [vmem:[#allocation5 + $0x188] sm:$0xff] }
 0x35d   :  { %822 = vmatpush.msrb.mxu1 %v155_v58  ;;  %851 = vmatpush.msra.mxu0 %v232_v33  ;;  %v218_v33 = vld [vmem:[#allocation5 + $0x8] sm:$0xff] }
 0x35e   :  { %871 = vmatpush.msra.mxu2 %v248_v46  ;;  %913 = vmatpush.msra.mxu3 %v278_v60  ;;  %v249_v46 = vld [vmem:[#allocation5 + $0x100] sm:$0xff] }
 0x35f   :  { %891 = vmatpush.msra.mxu1 %v264_v35  ;;  %852 = vmatpush.msra.mxu0 %v231_v37  ;;  %v237_v35 = vld [vmem:[#allocation5 + $0xa0] sm:$0xff]  ;;  %v250_v37 = vld [vmem:[#allocation5 + $0x108] sm:$0xff] }
 0x360   :  { %872 = vmatpush.msra.mxu2 %v247_v51  ;;  %914 = vmatpush.msra.mxu3 %v277_v0  ;;  %v235_v51 = vld [vmem:[#allocation5 + $0x90] sm:$0xff]  ;;  %v265_v60 = vld [vmem:[#allocation5 + $0x180] sm:$0xff] }
 0x361   :  { %892 = vmatpush.msra.mxu1 %v263_v39  ;;  %853 = vmatpush.msra.mxu0 %v230_v42  ;;  %v269_v39 = vld [vmem:[#allocation5 + $0x1a0] sm:$0xff] }
 0x362   :  { %873 = vmatpush.msra.mxu2 %v246_v59  ;;  %915 = vmatpush.msra.mxu3 %v276_v5  ;;  %v217_v42 = vld [vmem:[#allocation5] sm:$0xff] }
 0x363   :  { %893 = vmatpush.msra.mxu1 %v262_v44  ;;  %854 = vmatpush.msra.mxu0 %v229_v53  ;;  %v236_v44 = vld [vmem:[#allocation5 + $0x98] sm:$0xff]  ;;  %v267_v53 = vld [vmem:[#allocation5 + $0x190] sm:$0xff]  ;;  %v233_v59 = vld [vmem:[#allocation5 + $0x80] sm:$0xff] }
 0x364   :  { %874 = vmatpush.msra.mxu2 %v245_v63  ;;  %916 = vmatpush.msra.mxu3 %v275_v10  ;;  %v294_v63 = vld [vmem:[%s1778_s9 + $0x68] sm:$0xff]  ;;  %v293_v0 = vld [vmem:[%s1778_s9 + $0x60] sm:$0xff] }
 0x365   :  { %894 = vmatpush.msra.mxu1 %v261_v55  ;;  %855 = vmatpush.msra.mxu0 %v228_v61  ;;  %v234_v55 = vld [vmem:[#allocation5 + $0x88] sm:$0xff]  ;;  %v296_v61 = vld [vmem:[%s1778_s9 + $0x78] sm:$0xff] }
 0x366   :  { %875 = vmatpush.msra.mxu2 %v244_v4  ;;  %917 = vmatpush.msra.mxu3 %v274_v15  ;;  %v287_v15 = vld [vmem:[%s1778_s9 + $0x30] sm:$0xff] }
 0x367   :  { %895 = vmatpush.msra.mxu1 %v260_v62  ;;  %856 = vmatpush.msra.mxu0 %v227_v2  ;;  %v295_v62 = vld [vmem:[%s1778_s9 + $0x70] sm:$0xff] }
 0x368   :  { %876 = vmatpush.msra.mxu2 %v243_v9  ;;  %918 = vmatpush.msra.mxu3 %v273_v19  ;;  %v283_v19 = vld [vmem:[%s1778_s9 + $0x10] sm:$0xff] }
 0x369   :  { %896 = vmatpush.msra.mxu1 %v259_v3  ;;  %857 = vmatpush.msra.mxu0 %v226_v6 }
 0x36a   :  { %877 = vmatpush.msra.mxu2 %v242_v14  ;;  %919 = vmatpush.msra.mxu3 %v272_v23  ;;  %v288_v14 = vld [vmem:[%s1778_s9 + $0x38] sm:$0xff]  ;;  %v297_v23 = vld [vmem:[%s1779_s10] sm:$0xff] }
 0x36b   :  { %897 = vmatpush.msra.mxu1 %v258_v7  ;;  %858 = vmatpush.msra.mxu0 %v225_v12  ;;  %v290_v12 = vld [vmem:[%s1778_s9 + $0x48] sm:$0xff] }
 0x36c   :  { %878 = vmatpush.msra.mxu2 %v241_v18  ;;  %920 = vmatpush.msra.mxu3 %v271_v29  ;;  %v284_v18 = vld [vmem:[%s1778_s9 + $0x18] sm:$0xff] }
 0x36d   :  { %898 = vmatpush.msra.mxu1 %v257_v13  ;;  %859 = vmatpush.msra.mxu0 %v224_v16  ;;  %v289_v13 = vld [vmem:[%s1778_s9 + $0x40] sm:$0xff]  ;;  %v286_v16 = vld [vmem:[%s1778_s9 + $0x28] sm:$0xff] }
 0x36e   :  { %879 = vmatpush.msra.mxu2 %v240_v22  ;;  %921 = vmatpush.msra.mxu3 %v270_v41  ;;  %v298_v22 = vld [vmem:[%s1779_s10 + $0x8] sm:$0xff] }
 0x36f   :  { %899 = vmatpush.msra.mxu1 %v256_v17  ;;  %860 = vmatpush.msra.mxu0 %v223_v20  ;;  %v285_v17 = vld [vmem:[%s1778_s9 + $0x20] sm:$0xff]  ;;  %v282_v20 = vld [vmem:[%s1778_s9 + $0x8] sm:$0xff] }
 0x370   :  { %880 = vmatpush.msra.mxu2 %v239_v28  ;;  %922 = vmatpush.msra.mxu3 %v269_v39 }
 0x371   :  { %900 = vmatpush.msra.mxu1 %v255_v21  ;;  %861 = vmatpush.msra.mxu0 %v222_v26  ;;  %v281_v21 = vld [vmem:[%s1778_s9] sm:$0xff]  ;;  %s1143_s9 = smov [#allocation7]  }
 0x372   :  { %881 = vmatpush.msra.mxu2 %v238_v40  ;;  %923 = vmatpush.msra.mxu3 %v268_v48  ;;  %v977_v40 = vand.u32 127, %v976_v38  ;;  %s1008_s10 = sshll.u32 %s1143_s9, 4  ;;  %s1009_s10 = int_to_ptr.vmem [resolvable:$true] %s1008_s10 }
 0x373   :  { %901 = vmatpush.msra.mxu1 %v254_v27  ;;  %862 = vmatpush.msra.mxu0 %v221_v34 }
 0x374   :  { %882 = vmatpush.msra.mxu2 %v237_v35  ;;  %924 = vmatpush.msra.mxu3 %v267_v53  ;;  %vm978_vm10 = vcmp.lt.s32.totalorder %v977_v40, 2 }
 0x375   :  { %902 = vmatpush.msra.mxu1 %v253_v36  ;;  %863 = vmatpush.msra.mxu0 %v220_v45 }
 0x376   :  { %883 = vmatpush.msra.mxu2 %v236_v44  ;;  %925 = vmatpush.msra.mxu3 %v266_v57 }
 0x377   :  { %903 = vmatpush.msra.mxu1 %v252_v47  ;;  %864 = vmatpush.msra.mxu0 %v219_v49 }
 0x378   :  { %884 = vmatpush.msra.mxu2 %v235_v51  ;;  %926 = vmatpush.msra.mxu3 %v265_v60 }
 0x379   :  { %904 = vmatpush.msra.mxu1 %v251_v50  ;;  %865 = vmatpush.msra.mxu0 %v218_v33 }
 0x37a   :  { %885 = vmatpush.msra.mxu2 %v234_v55 }
 0x37b   :  { %905 = vmatpush.msra.mxu1 %v250_v37  ;;  %866 = vmatpush.msra.mxu0 %v217_v42 }
 0x37c   :  { %886 = vmatpush.msra.mxu2 %v233_v59 }
 0x37d   :  { %906 = vmatpush.msra.mxu1 %v249_v46 }
 0x3a6   :  { %v743_v25 = vpop.permute.xlu2 %742 }
 0x3ae   :  { %v747_v54 = vpop.permute.xlu2 %746 }
 0x3b6   :  { %v739_v32 = vpop.permute.xlu1 %738 }
 0x3b7   :  { %v760_v8 = vsel %vm759_vm6, %v758_v43, %v739_v32 }
 0x3b8   :  { %v762_v52 = vsel %vm761_vm7, %v760_v8, %v743_v25 }
 0x3b9   :  { %v764_v58 = vsel %vm763_vm8, %v762_v52, %v747_v54 }
 0x3ce   :  { %v751_v56 = vpop.permute.xlu0 %750 }
 0x3cf   :  { %v766_v31 = vsel %vm765_vm9, %v764_v58, %v751_v56 }
 0x3d0   :  { %783 = vmatmul.f32.vlgmr.msrb.gmra.mxu0 %v766_v31  ;;  %803 = vmatmul.f32.vlgmr.msrb.gmra.mxu2 %v766_v31 }
 0x3d1   :  { %823 = vmatmul.f32.vlgmr.msrb.gmra.mxu1 %v766_v31  ;;  %843 = vmatmul.f32.vlgmr.msrb.gmra.mxu3 %v766_v31 }
 0x3d2   :  { %932 = vmatpush.msrb.mxu0 %v296_v61  ;;  %970 = vmatpush.msrb.mxu2 %v298_v22 }
 0x3d4   :  { %933 = vmatpush.msrb.mxu0 %v295_v62  ;;  %971 = vmatpush.msrb.mxu2 %v297_v23 }
 0x3d6   :  { %934 = vmatpush.msrb.mxu0 %v294_v63 }
 0x3d8   :  { %935 = vmatpush.msrb.mxu0 %v293_v0 }
 0x3da   :  { %936 = vmatpush.msrb.mxu0 %v292_v1 }
 0x3dc   :  { %937 = vmatpush.msrb.mxu0 %v291_v11 }
 0x3de   :  { %938 = vmatpush.msrb.mxu0 %v290_v12 }
 0x3e0   :  { %939 = vmatpush.msrb.mxu0 %v289_v13 }
 0x3e2   :  { %940 = vmatpush.msrb.mxu0 %v288_v14 }
 0x3e4   :  { %941 = vmatpush.msrb.mxu0 %v287_v15 }
 0x3e6   :  { %942 = vmatpush.msrb.mxu0 %v286_v16 }
 0x3e8   :  { %943 = vmatpush.msrb.mxu0 %v285_v17 }
 0x3ea   :  { %944 = vmatpush.msrb.mxu0 %v284_v18 }
 0x3ec   :  { %945 = vmatpush.msrb.mxu0 %v283_v19 }
 0x3ee   :  { %946 = vmatpush.msrb.mxu0 %v282_v20 }
 0x3f0   :  { %947 = vmatpush.msrb.mxu0 %v281_v21 }
 0x44d   :  { %v784_v2 = vpop.f32.mrf.mxu0 }
 0x44e   :  { %v847_v3 = vmax.f32 %v784_v2, 0.0  ;;  %v824_v4 = vpop.f32.mrf.mxu1 }
 0x44f   :  { %v849_v5 = vmax.f32 %v824_v4, 0.0 }
 0x450   :  { %867 = vmatmul.f32.vlgmr.msra.gmra.mxu0 %v847_v3 }
 0x451   :  { %907 = vmatmul.f32.vlgmr.msra.gmra.mxu1 %v849_v5 }
 0x453   :  { %v804_v6 = vpop.f32.mrf.mxu2 }
 0x454   :  { %v848_v7 = vmax.f32 %v804_v6, 0.0  ;;  %v844_v9 = vpop.f32.mrf.mxu3 }
 0x455   :  { %v850_v10 = vmax.f32 %v844_v9, 0.0 }
 0x456   :  { %887 = vmatmul.f32.vlgmr.msra.gmra.mxu2 %v848_v7 }
 0x457   :  { %927 = vmatmul.f32.vlgmr.msra.gmra.mxu3 %v850_v10 }
 0x4cd   :  { %v868_v24 = vpop.f32.mrf.mxu0 }
 0x4ce   :  { %v908_v27 = vpop.f32.mrf.mxu1 }
 0x4d9   :  { %v888_v25 = vpop.f32.mrf.mxu2 }
 0x4da   :  { %v889_v26 = vadd.f32 %v888_v25, %v868_v24  ;;  %v928_v29 = vpop.f32.mrf.mxu3 }
 0x4dc   :  { %v909_v28 = vadd.f32 %v908_v27, %v889_v26 }
 0x4de   :  { %v929_v30 = vadd.f32 %v928_v29, %v909_v28 }
 0x4e0   :  { %v931_v32 = vmax.f32 %v929_v30, 0.0 }
 0x4e2   :  { %948 = vmatmul.f32.vlgmr.msrb.gmra.mxu0 %v931_v32 }
 0x55f   :  { %v949_v34 = vpop.f32.mrf.mxu0 }
 0x560   :  { %v952_v36 = vmax.f32 %v949_v34, 0.0 }
 0x562   :  { %1035 = vmatmul.msk.f32.vlgmr.msrb.gmra.mxu2 %vm753_vm3, %v952_v36 }
 0x5e5   :  { %v973_v41 = vpop.f32.mrf.mxu2 }
 0x5e6   :  { %v979_v43 = vsel %vm978_vm10, %v973_v41, -inf }
 0x5e7   :  { %980 = vmax.xlane.f32.xlu1 %v979_v43 }
 0x65a   :  { %v981_v45 = vpop.xlane.xlu1 %980 }
 0x65b   :  { %v982_v47 = vsub.f32 %v979_v43, %v981_v45 }
 0x65d   :  { %v983_v8 = vmul.f32 1.442695, %v982_v47 }
 0x65f   :  { %1049 = vpow2.f32 %v983_v8 }
 0x665   :  { %v1050_v49 = vpop.eup %1049 }
 0x666   :  { %985 = vadd.xlane.f32.xlu2 %v1050_v49 }
 0x6d9   :  { %v986_v50 = vpop.xlane.xlu2 %985 }
 0x6da   :  { %1051 = vrcp.f32 %v986_v50  ;;  %v998_v58 = vand.u32 2147483648, %v986_v50  ;;  %v996_v33 = vand.u32 2147483647, %v986_v50  ;;  %vm992_vm12 = vweird.f32 %v986_v50 }
 0x6dc   :  { %v999_v37 = vor.u32 1.1754944e-38, %v998_v58  ;;  %vm997_vm14 = vcmp.eq.f32.partialorder %v996_v33, 8.507059e+37 }
 0x6e0   :  { %v1052_v52 = vpop.eup %1051 }
 0x6e1   :  { %v988_v54 = vmul.f32 %v1052_v52, %v986_v50  ;;  %vm993_vm11 = vweird.f32 %v1052_v52 }
 0x6e2   :  { %vm994_vm13 = vmor %vm992_vm12, %vm993_vm11 }
 0x6e3   :  { %v989_v56 = vsub.f32 1.0, %v988_v54 }
 0x6e5   :  { %v990_v31 = vmul.f32 %v1052_v52, %v989_v56 }
 0x6e7   :  { %v991_v35 = vadd.f32 %v1052_v52, %v990_v31 }
 0x6e9   :  { %v995_v39 = vsel %vm994_vm13, %v1052_v52, %v991_v35 }
 0x6ea   :  { %v1000_v42 = vsel %vm997_vm14, %v999_v37, %v995_v39 }
 0x6eb   :  { %v1001_v44 = vmul.f32 %v1050_v49, %v1000_v42 }
 0x6ed   :  { %1002 = vst [vmem:[#allocation7] sm:$0xff] %v1001_v44 }
 0x6ee   :  { %1013 = dma.vmem_to_hbm [thread:$0]  %s1009_s10, 128, %s1011_s14, [#allocation4]  }
 0x6ef   :  { %1129 = dma.done.wait [#allocation4], 128  }
 0x6f0   :  { %1130 = vsyncadd [#allocation4], 4294967168 }
 0x6f1   :  { %1018 = vsyncpa [#allocation3], 1 }
 0x6f2   :  { %1019 = vsyncpa [#allocation6], 1 }
 0x6f3   :  { %1020 = vsyncpa [#allocation4], 1 }

</bundles_post_ra>
